<compile_context>
chip_gen: v7x
topology: tpu7x:2x2x1
jax: 0.10.0
libtpu: 0.0.40
codegen_flags: <defaults>
</compile_context>

<pallas_src>
import functools

import jax
import jax.numpy as jnp
from jax.experimental import pallas as pl
from jax.experimental.pallas import tpu as pltpu


def _round_up(x, m):
    return (x + m - 1) // m * m


def _conv2d_kernel(x_ref, w_ref, b_ref, o_ref, *, k, th, ow, cin_p, cout_p):
    # x_ref: (Hp, Wp, cin_p)        zero-padded bf16 image (resident across the h axis)
    # w_ref: (k*k, cin_p, cout_p)   bf16 weight, leading dim ordered as (dy, dx)
    # b_ref: (1, cout_p)            f32 bias
    # o_ref: (TH, OW_pad, cout_p)   f32 output row-tile
    h = pl.program_id(1)
    row0 = pl.multiple_of(h * th, th)

    # Per-tap MXU matmuls accumulated in f32.  No concatenated im2col operand, no
    # channel padding to 128: K = cin_p (~Cin).  All taps live inside one grid step.
    acc = jnp.zeros((th * ow, cout_p), jnp.float32)
    for dy in range(k):
        for dx in range(k):
            tap = x_ref[pl.ds(row0 + dy, th), pl.ds(dx, ow), :]   # (TH, OW, cin_p) bf16
            lhs = tap.reshape(th * ow, cin_p)                     # free: OW % 16 == 0
            acc = acc + jnp.dot(lhs, w_ref[dy * k + dx, :, :],
                                preferred_element_type=jnp.float32)

    y = acc + b_ref[...]                                          # single f32 epilogue add
    o_ref[...] = y.reshape(th, ow, cout_p).astype(o_ref.dtype)


def _vmem_limit_and_budget():
    """Generation-aware VMEM limit (passed to Mosaic) and per-call planning budget."""
    try:
        cap = int(pltpu.get_tpu_info().vmem_capacity_bytes)       # 128 MiB v5e/v6e, 64 MiB v7x
    except Exception:
        cap = 64 * 1024 * 1024                                    # conservative (v7x)
    limit = min(cap * 3 // 4, 96 * 1024 * 1024)
    return limit, limit * 3 // 4


def _vmem_bytes(th, ow_pad, hp, wp_pad, cin_p, cout_p, k, opbytes):
    """Rough per-step VMEM footprint (image x2 buffers + weight + out x2 + acc + taps)."""
    cin_lanes = _round_up(cin_p, 128)                             # physical lane padding
    img = 2 * hp * _round_up(wp_pad, 16) * cin_lanes * opbytes    # double-buffered image
    wgt = k * k * _round_up(cin_p, 16) * cout_p * opbytes         # resident weight
    outb = 2 * th * ow_pad * cout_p * 4                           # double-buffered out tile
    acc = th * ow_pad * cout_p * 4                                # f32 accumulator
    taps = 2 * th * ow_pad * cin_lanes * opbytes                  # in-flight tap copies
    return img + wgt + outb + acc + taps + (1 << 20)              # +1 MiB slack


def _pick_th(oh, ow_pad, cin_p, cout_p, k, budget, opbytes):
    """Largest row-tile that fits the generation-aware budget (OH need not divide it)."""
    wp_pad = ow_pad + k - 1
    for th in (256, 128, 64, 32, 16, 8):
        if th > max(_round_up(oh, 8), 8):
            continue
        hp = _round_up(oh, th) + k - 1
        if _vmem_bytes(th, ow_pad, hp, wp_pad, cin_p, cout_p, k, opbytes) <= budget:
            return th
    return 8


def conv2d_same(x_nchw, weight, bias=None, *, stride=1, dilation=1, groups=1,
                operand_dtype=jnp.bfloat16):
    """Forward of the PyTorch `Conv2d` wrapper (padding = kernel_size // 2)."""
    if stride != 1 or dilation != 1 or groups != 1:
        # TODO(synk): stride>1 / dilation>1 / grouped conv not implemented in the kernel.
        raise NotImplementedError("only stride=1, dilation=1, groups=1 supported")

    N, Cin, H, W = x_nchw.shape
    Cout, Cin_w, kh, kw = weight.shape
    assert Cin_w == Cin and kh == kw, "square kernel, groups=1 expected"
    k = kh
    p = k // 2
    OH = H + 2 * p - k + 1
    OW = W + 2 * p - k + 1

    opbytes = jnp.dtype(operand_dtype).itemsize
    cin_p = _round_up(Cin, 16)      # alignment pad only (NOT 128): DMA/FLOPs scale with Cin
    cout_p = _round_up(Cout, 128)   # lane-dense outputs -> unmasked stores
    OW_pad = _round_up(OW, 16)      # keeps (TH, OW, C) <-> (TH*OW, C) reshapes layout-free
    Wp = OW_pad + k - 1

    vmem_limit, budget = _vmem_limit_and_budget()
    TH = _pick_th(OH, OW_pad, cin_p, cout_p, k, budget, opbytes)
    OH_pad = _round_up(OH, TH)      # handles non-divisible OH (extra rows sliced off below)
    Hp = OH_pad + k - 1

    # NCHW -> NHWC, cast to MXU-native bf16, halo + alignment pad fused into one pad.
    x = jnp.transpose(x_nchw, (0, 2, 3, 1)).astype(operand_dtype)
    x = jnp.pad(x, ((0, 0), (p, Hp - p - H), (p, Wp - p - W), (0, cin_p - Cin)))

    # (Cout, Cin, k, k) -> (k*k, cin_p, cout_p), bf16; leading dim ordered (dy, dx).
    w = jnp.transpose(weight, (2, 3, 1, 0)).astype(operand_dtype)      # (k, k, Cin, Cout)
    w = jnp.pad(w, ((0, 0), (0, 0), (0, cin_p - Cin), (0, cout_p - Cout)))
    w = w.reshape(k * k, cin_p, cout_p)

    if bias is None:
        b = jnp.zeros((1, cout_p), jnp.float32)
    else:
        b = jnp.pad(bias.astype(jnp.float32), (0, cout_p - Cout)).reshape(1, cout_p)

    grid = (N, OH_pad // TH)
    kernel = functools.partial(_conv2d_kernel, k=k, th=TH, ow=OW_pad,
                               cin_p=cin_p, cout_p=cout_p)

    out_nhwc = pl.pallas_call(
        kernel,
        out_shape=jax.ShapeDtypeStruct((N, OH_pad, OW_pad, cout_p), jnp.float32),
        grid=grid,
        in_specs=[
            # whole padded image per batch element; constant along h -> DMA'd once per n
            pl.BlockSpec((None, Hp, Wp, cin_p), lambda n, h: (n, 0, 0, 0)),
            # weight / bias: constant index maps -> fetched once, stay resident
            pl.BlockSpec((k * k, cin_p, cout_p), lambda n, h: (0, 0, 0)),
            pl.BlockSpec((1, cout_p), lambda n, h: (0, 0)),
        ],
        out_specs=pl.BlockSpec((None, TH, OW_pad, cout_p), lambda n, h: (n, h, 0, 0)),
        compiler_params=pltpu.CompilerParams(
            dimension_semantics=("parallel", "parallel"),
            vmem_limit_bytes=vmem_limit,
        ),
    )(x, w, b)

    # Drop padded rows/cols/channels; NHWC -> NCHW to match PyTorch I/O semantics.
    out = out_nhwc[:, :OH, :OW, :Cout]
    return jnp.transpose(out, (0, 3, 1, 2)).astype(x_nchw.dtype)


def _reference_conv2d(x_nchw, weight, bias, k):
    """Pure-JAX reference (full-precision lax conv) for correctness checking."""
    p = k // 2
    y = jax.lax.conv_general_dilated(
        x_nchw, weight, window_strides=(1, 1), padding=((p, p), (p, p)),
        dimension_numbers=("NCHW", "OIHW", "NCHW"),
        precision=jax.lax.Precision.HIGHEST)
    if bias is not None:
        y = y + bias[None, :, None, None]
    return y


if __name__ == "__main__":
    key = jax.random.PRNGKey(0)
    N, C_in, H, W = 2, 4, 16, 16
    C_out, k = 8, 3

    kx, kw, kb = jax.random.split(key, 3)
    x = jax.random.normal(kx, (N, C_in, H, W), jnp.float32)
    weight = 0.1 * jax.random.normal(kw, (C_out, C_in, k, k), jnp.float32)
    bias = 0.1 * jax.random.normal(kb, (C_out,), jnp.float32)

    out = jax.block_until_ready(conv2d_same(x, weight, bias))

    # Kernel uses bf16 MXU operands with f32 accumulation; compare against an f32
    # reference computed on the same bf16-rounded operands (isolates kernel correctness).
    xq = x.astype(jnp.bfloat16).astype(jnp.float32)
    wq = weight.astype(jnp.bfloat16).astype(jnp.float32)
    ref = _reference_conv2d(xq, wq, bias, k)

    assert out.shape == ref.shape == (N, C_out, H, W)
    max_err = float(jnp.max(jnp.abs(out - ref)))
    assert jnp.allclose(out, ref, atol=2e-3, rtol=2e-3), f"mismatch vs reference: {max_err}"

    print("KERNEL_OK")
</pallas_src>

<mosaic_0001>
module attributes {stable_mosaic.version = 11 : i64} {
  func.func @_conv2d_kernel(%arg0: i32, %arg1: i32, %arg2: memref<1x18x18x16xbf16, #tpu.memory_space<vmem>>, %arg3: memref<9x16x128xbf16, #tpu.memory_space<vmem>>, %arg4: memref<1x128xf32, #tpu.memory_space<vmem>>, %arg5: memref<1x16x16x128xf32, #tpu.memory_space<vmem>>) attributes {dimension_semantics = [#tpu.dimension_semantics<parallel>, #tpu.dimension_semantics<parallel>], iteration_bounds = array<i64: 2, 1>, scalar_prefetch = 0 : i64, scratch_operands = 0 : i64, tpu.core_type = #tpu.core_type<tc>, window_params = [{transform_indices = @transform_0, window_bounds = array<i64: 1, 18, 18, 16>}, {pipeline_mode = #tpu.pipeline_mode<synchronous>, transform_indices = @transform_1, window_bounds = array<i64: 9, 16, 128>}, {pipeline_mode = #tpu.pipeline_mode<synchronous>, transform_indices = @transform_2, window_bounds = array<i64: 1, 128>}, {transform_indices = @transform_3, window_bounds = array<i64: 1, 16, 16, 128>}]} {
    %c16_i32 = arith.constant 16 : i32
    %0 = arith.muli %arg1, %c16_i32 : i32
    %1 = tpu.assume_multiple %0, 16 : i32
    %cst = arith.constant 0.000000e+00 : f32
    %2 = vector.broadcast %cst : f32 to vector<256x128xf32>
    %c0_i32 = arith.constant 0 : i32
    %3 = arith.addi %1, %c0_i32 : i32
    %c0 = arith.constant 0 : index
    %4 = arith.index_cast %3 : i32 to index
    %c0_0 = arith.constant 0 : index
    %c0_1 = arith.constant 0 : index
    %5 = vector.load %arg2[%c0, %4, %c0_0, %c0_1] : memref<1x18x18x16xbf16, #tpu.memory_space<vmem>>, vector<1x16x16x16xbf16>
    %6 = vector.shape_cast %5 : vector<1x16x16x16xbf16> to vector<16x16x16xbf16>
    %7 = vector.shape_cast %6 : vector<16x16x16xbf16> to vector<256x16xbf16>
    %c0_2 = arith.constant 0 : index
    %c0_3 = arith.constant 0 : index
    %c0_4 = arith.constant 0 : index
    %8 = vector.load %arg3[%c0_2, %c0_3, %c0_4] : memref<9x16x128xbf16, #tpu.memory_space<vmem>>, vector<1x16x128xbf16>
    %9 = vector.shape_cast %8 : vector<1x16x128xbf16> to vector<16x128xbf16>
    %cst_5 = arith.constant dense<0.000000e+00> : vector<256x128xf32>
    %10 = tpu.matmul %7, %9, %cst_5 {dimension_numbers = #tpu.dot_dimension_numbers<[1], [0], [0], [1], [0, 0, 1, 1], [], []>} : vector<256x16xbf16>, vector<16x128xbf16>, vector<256x128xf32> -> vector<256x128xf32>
    %11 = arith.addf %2, %10 : vector<256x128xf32>
    %c0_i32_6 = arith.constant 0 : i32
    %12 = arith.addi %1, %c0_i32_6 : i32
    %c0_7 = arith.constant 0 : index
    %13 = arith.index_cast %12 : i32 to index
    %c1 = arith.constant 1 : index
    %c0_8 = arith.constant 0 : index
    %14 = vector.load %arg2[%c0_7, %13, %c1, %c0_8] : memref<1x18x18x16xbf16, #tpu.memory_space<vmem>>, vector<1x16x16x16xbf16>
    %15 = vector.shape_cast %14 : vector<1x16x16x16xbf16> to vector<16x16x16xbf16>
    %16 = vector.shape_cast %15 : vector<16x16x16xbf16> to vector<256x16xbf16>
    %c1_9 = arith.constant 1 : index
    %c0_10 = arith.constant 0 : index
    %c0_11 = arith.constant 0 : index
    %17 = vector.load %arg3[%c1_9, %c0_10, %c0_11] : memref<9x16x128xbf16, #tpu.memory_space<vmem>>, vector<1x16x128xbf16>
    %18 = vector.shape_cast %17 : vector<1x16x128xbf16> to vector<16x128xbf16>
    %cst_12 = arith.constant dense<0.000000e+00> : vector<256x128xf32>
    %19 = tpu.matmul %16, %18, %cst_12 {dimension_numbers = #tpu.dot_dimension_numbers<[1], [0], [0], [1], [0, 0, 1, 1], [], []>} : vector<256x16xbf16>, vector<16x128xbf16>, vector<256x128xf32> -> vector<256x128xf32>
    %20 = arith.addf %11, %19 : vector<256x128xf32>
    %c0_i32_13 = arith.constant 0 : i32
    %21 = arith.addi %1, %c0_i32_13 : i32
    %c0_14 = arith.constant 0 : index
    %22 = arith.index_cast %21 : i32 to index
    %c2 = arith.constant 2 : index
    %c0_15 = arith.constant 0 : index
    %23 = vector.load %arg2[%c0_14, %22, %c2, %c0_15] : memref<1x18x18x16xbf16, #tpu.memory_space<vmem>>, vector<1x16x16x16xbf16>
    %24 = vector.shape_cast %23 : vector<1x16x16x16xbf16> to vector<16x16x16xbf16>
    %25 = vector.shape_cast %24 : vector<16x16x16xbf16> to vector<256x16xbf16>
    %c2_16 = arith.constant 2 : index
    %c0_17 = arith.constant 0 : index
    %c0_18 = arith.constant 0 : index
    %26 = vector.load %arg3[%c2_16, %c0_17, %c0_18] : memref<9x16x128xbf16, #tpu.memory_space<vmem>>, vector<1x16x128xbf16>
    %27 = vector.shape_cast %26 : vector<1x16x128xbf16> to vector<16x128xbf16>
    %cst_19 = arith.constant dense<0.000000e+00> : vector<256x128xf32>
    %28 = tpu.matmul %25, %27, %cst_19 {dimension_numbers = #tpu.dot_dimension_numbers<[1], [0], [0], [1], [0, 0, 1, 1], [], []>} : vector<256x16xbf16>, vector<16x128xbf16>, vector<256x128xf32> -> vector<256x128xf32>
    %29 = arith.addf %20, %28 : vector<256x128xf32>
    %c1_i32 = arith.constant 1 : i32
    %30 = arith.addi %1, %c1_i32 : i32
    %c0_20 = arith.constant 0 : index
    %31 = arith.index_cast %30 : i32 to index
    %c0_21 = arith.constant 0 : index
    %c0_22 = arith.constant 0 : index
    %32 = vector.load %arg2[%c0_20, %31, %c0_21, %c0_22] : memref<1x18x18x16xbf16, #tpu.memory_space<vmem>>, vector<1x16x16x16xbf16>
    %33 = vector.shape_cast %32 : vector<1x16x16x16xbf16> to vector<16x16x16xbf16>
    %34 = vector.shape_cast %33 : vector<16x16x16xbf16> to vector<256x16xbf16>
    %c3 = arith.constant 3 : index
    %c0_23 = arith.constant 0 : index
    %c0_24 = arith.constant 0 : index
    %35 = vector.load %arg3[%c3, %c0_23, %c0_24] : memref<9x16x128xbf16, #tpu.memory_space<vmem>>, vector<1x16x128xbf16>
    %36 = vector.shape_cast %35 : vector<1x16x128xbf16> to vector<16x128xbf16>
    %cst_25 = arith.constant dense<0.000000e+00> : vector<256x128xf32>
    %37 = tpu.matmul %34, %36, %cst_25 {dimension_numbers = #tpu.dot_dimension_numbers<[1], [0], [0], [1], [0, 0, 1, 1], [], []>} : vector<256x16xbf16>, vector<16x128xbf16>, vector<256x128xf32> -> vector<256x128xf32>
    %38 = arith.addf %29, %37 : vector<256x128xf32>
    %c1_i32_26 = arith.constant 1 : i32
    %39 = arith.addi %1, %c1_i32_26 : i32
    %c0_27 = arith.constant 0 : index
    %40 = arith.index_cast %39 : i32 to index
    %c1_28 = arith.constant 1 : index
    %c0_29 = arith.constant 0 : index
    %41 = vector.load %arg2[%c0_27, %40, %c1_28, %c0_29] : memref<1x18x18x16xbf16, #tpu.memory_space<vmem>>, vector<1x16x16x16xbf16>
    %42 = vector.shape_cast %41 : vector<1x16x16x16xbf16> to vector<16x16x16xbf16>
    %43 = vector.shape_cast %42 : vector<16x16x16xbf16> to vector<256x16xbf16>
    %c4 = arith.constant 4 : index
    %c0_30 = arith.constant 0 : index
    %c0_31 = arith.constant 0 : index
    %44 = vector.load %arg3[%c4, %c0_30, %c0_31] : memref<9x16x128xbf16, #tpu.memory_space<vmem>>, vector<1x16x128xbf16>
    %45 = vector.shape_cast %44 : vector<1x16x128xbf16> to vector<16x128xbf16>
    %cst_32 = arith.constant dense<0.000000e+00> : vector<256x128xf32>
    %46 = tpu.matmul %43, %45, %cst_32 {dimension_numbers = #tpu.dot_dimension_numbers<[1], [0], [0], [1], [0, 0, 1, 1], [], []>} : vector<256x16xbf16>, vector<16x128xbf16>, vector<256x128xf32> -> vector<256x128xf32>
    %47 = arith.addf %38, %46 : vector<256x128xf32>
    %c1_i32_33 = arith.constant 1 : i32
    %48 = arith.addi %1, %c1_i32_33 : i32
    %c0_34 = arith.constant 0 : index
    %49 = arith.index_cast %48 : i32 to index
    %c2_35 = arith.constant 2 : index
    %c0_36 = arith.constant 0 : index
    %50 = vector.load %arg2[%c0_34, %49, %c2_35, %c0_36] : memref<1x18x18x16xbf16, #tpu.memory_space<vmem>>, vector<1x16x16x16xbf16>
    %51 = vector.shape_cast %50 : vector<1x16x16x16xbf16> to vector<16x16x16xbf16>
    %52 = vector.shape_cast %51 : vector<16x16x16xbf16> to vector<256x16xbf16>
    %c5 = arith.constant 5 : index
    %c0_37 = arith.constant 0 : index
    %c0_38 = arith.constant 0 : index
    %53 = vector.load %arg3[%c5, %c0_37, %c0_38] : memref<9x16x128xbf16, #tpu.memory_space<vmem>>, vector<1x16x128xbf16>
    %54 = vector.shape_cast %53 : vector<1x16x128xbf16> to vector<16x128xbf16>
    %cst_39 = arith.constant dense<0.000000e+00> : vector<256x128xf32>
    %55 = tpu.matmul %52, %54, %cst_39 {dimension_numbers = #tpu.dot_dimension_numbers<[1], [0], [0], [1], [0, 0, 1, 1], [], []>} : vector<256x16xbf16>, vector<16x128xbf16>, vector<256x128xf32> -> vector<256x128xf32>
    %56 = arith.addf %47, %55 : vector<256x128xf32>
    %c2_i32 = arith.constant 2 : i32
    %57 = arith.addi %1, %c2_i32 : i32
    %c0_40 = arith.constant 0 : index
    %58 = arith.index_cast %57 : i32 to index
    %c0_41 = arith.constant 0 : index
    %c0_42 = arith.constant 0 : index
    %59 = vector.load %arg2[%c0_40, %58, %c0_41, %c0_42] : memref<1x18x18x16xbf16, #tpu.memory_space<vmem>>, vector<1x16x16x16xbf16>
    %60 = vector.shape_cast %59 : vector<1x16x16x16xbf16> to vector<16x16x16xbf16>
    %61 = vector.shape_cast %60 : vector<16x16x16xbf16> to vector<256x16xbf16>
    %c6 = arith.constant 6 : index
    %c0_43 = arith.constant 0 : index
    %c0_44 = arith.constant 0 : index
    %62 = vector.load %arg3[%c6, %c0_43, %c0_44] : memref<9x16x128xbf16, #tpu.memory_space<vmem>>, vector<1x16x128xbf16>
    %63 = vector.shape_cast %62 : vector<1x16x128xbf16> to vector<16x128xbf16>
    %cst_45 = arith.constant dense<0.000000e+00> : vector<256x128xf32>
    %64 = tpu.matmul %61, %63, %cst_45 {dimension_numbers = #tpu.dot_dimension_numbers<[1], [0], [0], [1], [0, 0, 1, 1], [], []>} : vector<256x16xbf16>, vector<16x128xbf16>, vector<256x128xf32> -> vector<256x128xf32>
    %65 = arith.addf %56, %64 : vector<256x128xf32>
    %c2_i32_46 = arith.constant 2 : i32
    %66 = arith.addi %1, %c2_i32_46 : i32
    %c0_47 = arith.constant 0 : index
    %67 = arith.index_cast %66 : i32 to index
    %c1_48 = arith.constant 1 : index
    %c0_49 = arith.constant 0 : index
    %68 = vector.load %arg2[%c0_47, %67, %c1_48, %c0_49] : memref<1x18x18x16xbf16, #tpu.memory_space<vmem>>, vector<1x16x16x16xbf16>
    %69 = vector.shape_cast %68 : vector<1x16x16x16xbf16> to vector<16x16x16xbf16>
    %70 = vector.shape_cast %69 : vector<16x16x16xbf16> to vector<256x16xbf16>
    %c7 = arith.constant 7 : index
    %c0_50 = arith.constant 0 : index
    %c0_51 = arith.constant 0 : index
    %71 = vector.load %arg3[%c7, %c0_50, %c0_51] : memref<9x16x128xbf16, #tpu.memory_space<vmem>>, vector<1x16x128xbf16>
    %72 = vector.shape_cast %71 : vector<1x16x128xbf16> to vector<16x128xbf16>
    %cst_52 = arith.constant dense<0.000000e+00> : vector<256x128xf32>
    %73 = tpu.matmul %70, %72, %cst_52 {dimension_numbers = #tpu.dot_dimension_numbers<[1], [0], [0], [1], [0, 0, 1, 1], [], []>} : vector<256x16xbf16>, vector<16x128xbf16>, vector<256x128xf32> -> vector<256x128xf32>
    %74 = arith.addf %65, %73 : vector<256x128xf32>
    %c2_i32_53 = arith.constant 2 : i32
    %75 = arith.addi %1, %c2_i32_53 : i32
    %c0_54 = arith.constant 0 : index
    %76 = arith.index_cast %75 : i32 to index
    %c2_55 = arith.constant 2 : index
    %c0_56 = arith.constant 0 : index
    %77 = vector.load %arg2[%c0_54, %76, %c2_55, %c0_56] : memref<1x18x18x16xbf16, #tpu.memory_space<vmem>>, vector<1x16x16x16xbf16>
    %78 = vector.shape_cast %77 : vector<1x16x16x16xbf16> to vector<16x16x16xbf16>
    %79 = vector.shape_cast %78 : vector<16x16x16xbf16> to vector<256x16xbf16>
    %c8 = arith.constant 8 : index
    %c0_57 = arith.constant 0 : index
    %c0_58 = arith.constant 0 : index
    %80 = vector.load %arg3[%c8, %c0_57, %c0_58] : memref<9x16x128xbf16, #tpu.memory_space<vmem>>, vector<1x16x128xbf16>
    %81 = vector.shape_cast %80 : vector<1x16x128xbf16> to vector<16x128xbf16>
    %cst_59 = arith.constant dense<0.000000e+00> : vector<256x128xf32>
    %82 = tpu.matmul %79, %81, %cst_59 {dimension_numbers = #tpu.dot_dimension_numbers<[1], [0], [0], [1], [0, 0, 1, 1], [], []>} : vector<256x16xbf16>, vector<16x128xbf16>, vector<256x128xf32> -> vector<256x128xf32>
    %83 = arith.addf %74, %82 : vector<256x128xf32>
    %c0_60 = arith.constant 0 : index
    %c0_61 = arith.constant 0 : index
    %84 = vector.load %arg4[%c0_60, %c0_61] : memref<1x128xf32, #tpu.memory_space<vmem>>, vector<1x128xf32>
    %85 = vector.broadcast %84 : vector<1x128xf32> to vector<256x128xf32>
    %86 = arith.addf %83, %85 : vector<256x128xf32>
    %87 = vector.shape_cast %86 : vector<256x128xf32> to vector<16x16x128xf32>
    %c0_62 = arith.constant 0 : index
    %c0_63 = arith.constant 0 : index
    %c0_64 = arith.constant 0 : index
    %c0_65 = arith.constant 0 : index
    %88 = vector.load %arg5[%c0_62, %c0_63, %c0_64, %c0_65] : memref<1x16x16x128xf32, #tpu.memory_space<vmem>>, vector<1x16x16x128xf32>
    %89 = vector.shape_cast %88 : vector<1x16x16x128xf32> to vector<16x16x128xf32>
    %90 = vector.shape_cast %87 : vector<16x16x128xf32> to vector<1x16x16x128xf32>
    tpu.vector_store %arg5[%c0_62, %c0_63, %c0_64, %c0_65], %90 {strides = array<i32>} : memref<1x16x16x128xf32, #tpu.memory_space<vmem>>, vector<1x16x16x128xf32>,
    return
  }
  func.func @transform_0(%arg0: i32, %arg1: i32) -> (i32, i32, i32, i32) {
    %c0_i32 = arith.constant 0 : i32
    %c0_i32_0 = arith.constant 0 : i32
    %c0_i32_1 = arith.constant 0 : i32
    %c0_i32_2 = arith.constant 0 : i32
    return %arg0, %c0_i32, %c0_i32_0, %c0_i32_1 : i32, i32, i32, i32
  }
  func.func @transform_1(%arg0: i32, %arg1: i32) -> (i32, i32, i32) {
    %c0_i32 = arith.constant 0 : i32
    %c0_i32_0 = arith.constant 0 : i32
    %c0_i32_1 = arith.constant 0 : i32
    %c0_i32_2 = arith.constant 0 : i32
    return %c0_i32, %c0_i32_0, %c0_i32_1 : i32, i32, i32
  }
  func.func @transform_2(%arg0: i32, %arg1: i32) -> (i32, i32) {
    %c0_i32 = arith.constant 0 : i32
    %c0_i32_0 = arith.constant 0 : i32
    %c0_i32_1 = arith.constant 0 : i32
    return %c0_i32, %c0_i32_0 : i32, i32
  }
  func.func @transform_3(%arg0: i32, %arg1: i32) -> (i32, i32, i32, i32) {
    %c0_i32 = arith.constant 0 : i32
    %c0_i32_0 = arith.constant 0 : i32
    %c0_i32_1 = arith.constant 0 : i32
    return %arg0, %arg1, %c0_i32, %c0_i32_0 : i32, i32, i32, i32
  }
}

</mosaic_0001>

<bundles_post_ra>
// kernel: tpu_custom_call.1
= control target key start
LH: loop header
LB: loop body
LE: loop exit
PB: predicated region body
PF: predicated region fallthrough
CT: control target
= control target key end

     0   :  { %8 = vsyncpa [#allocation3], 0  ;;  %s8388_s0 = inlined_call_operand.vmem [shape: bf16[2,18,18,16], index: 0, kind: input, shape index: {}]   ;;  %s8389_s1 = inlined_call_operand.vmem [shape: bf16[9,16,128], index: 1, kind: input, shape index: {}]   ;;  %s8390_s2 = inlined_call_operand.vmem [shape: f32[1,128], index: 2, kind: input, shape index: {}]   ;;  %s8391_s3 = inlined_call_operand.hbm [shape: f32[2,16,16,128], index: 3, kind: output, shape index: {}]  }
   0x1   :  { %10 = vsyncpa [#allocation3 + $0x1], 0  ;;  %s6521_s12 = smov 0   ;;  %s6523_s13 = smov 0  }
   0x2   :  { %s6525_s14 = smov 0   ;;  %s6527_s15 = smov 0  }
   0x3   :  { %s6529_s16 = smov 0   ;;  %s6531_s17 = smov 0  }
   0x4 LB: > { %s4960_s18 = sadd.s32 4294967295, %s6496_s17   ;;  %s4961_s19 = sadd.s32 4294967294, %s6496_s17   ;;  %s6496_s17 = sphi %s6531_s17, %s16_s17   ;;  %s6492_s16 = sphi %s6529_s16, %s8462_s16   ;;  %s6488_s15 = sphi %s6527_s15, %s8461_s15   ;;  %s6484_s14 = sphi %s6525_s14, %s8460_s14   ;;  %s6480_s13 = sphi %s6523_s13, %s8459_s13   ;;  %s6476_s12 = sphi %s6521_s12, %s8458_s12  }
   0x5   : > { %s28_s20 = sadd.s32 1, %s6492_s16  ;;  %s105_s21 = sadd.s32 1, %s6484_s14 }
   0x6   : > { %p30_p0 = scmp.ge.s32.totalorder %s28_s20, 2  ;;  %p115_p1 = scmp.ne.s32.totalorder %s6484_s14, %s6480_s13 }
   0x7   : > { %p116_p2 = scmp.eq.s32.totalorder %s4960_s18, 1  ;;  %p121_p3 = scmp.ne.s32.totalorder %s6480_s13, %s6476_s12 }
   0x8   : > { %s8464_s20 = smov (%p30_p0, %s28_s20), 0  ;;  %p122_p5 = scmp.eq.s32.totalorder %s4961_s19, 1 }
   0x9   : > { %p6561_p4 = por %p116_p2, %p115_p1  ;;  %s100_s23 = ssub.s32 %s6492_s16, %s8464_s20 }
   0xa   : > { %p4964_p6 = scmp.ge.s32.totalorder %s6496_s17, 1  ;;  %p103_p7 = scmp.eq.s32.totalorder %s100_s23, 0 }
   0xb   : > { %p6568_p8 = por %p122_p5, %p121_p3  ;;  %p154_p9 = scmp.lt.s32.totalorder %s6496_s17, 3 }
   0xc   : > { %s6574_s25 = scalar_select %p103_p7, %s6484_s14, %s105_s21  }
   0xd   : > { %p155_p10 = pnand %p4964_p6, %p154_p9 }
   0xf   : > { %158 = sbr.rel (%p155_p10) target bundleno = 609 (0x261), region = 32 }
  0x16   : > { %v6302_v0 = vld [vmem:[%s8389_s1 + $0x8] sm:$0xff]   ;;  %p178_p11 = scmp.lt.s32.totalorder %s6488_s15, 1  ;;  %v6303_v1 = vld [vmem:[%s8389_s1 + $0x20] sm:$0xff]   ;;  %vm239_vm0 = vsmask.f32 3328  ;;  %vm683_vm3 = vcmask 130048  }
  0x17   : > { %5680 = vmatprep.subr.bf16.mxu1 %v6302_v0  ;;  %v6587_v2 = vld [vmem:[%s8389_s1] sm:$0xff]   ;;  %5816 = vmatprep.subr.bf16.mxu0 %v6303_v1  ;;  %v6593_v3 = vld [vmem:[%s8389_s1 + $0x28] sm:$0xff]   ;;  %vm240_vm1 = vsmask.f32 7440  ;;  %vm1236_vm4 = vcmask 1042432   ;;  %vm1237_vm5 = vcmask 1046532  }
  0x18   : > { %s179_s30 = scalar_select %p178_p11, %s6488_s15, 1  ;;  %5681 = vmatpush3.bf16.msra.mxu1 %v6302_v0  ;;  %5817 = vmatpush3.bf16.msra.mxu0 %v6303_v1  ;;  %vm6617_vm2 = vmor %vm239_vm0, %vm240_vm1 }
  0x19   : > { %5714 = vmatprep.subr.bf16.mxu1 %v6587_v2  ;;  %5850 = vmatprep.subr.bf16.mxu0 %v6593_v3  ;;  %vm6839_vm6 = vmor %vm1236_vm4, %vm1237_vm5  ;;  %s175_s9 = sand.u32 1, %s6480_s13   ;;  %s5526_s21 = sshll.u32 %s6488_s15, 12 }
  0x1a   : > { %s6244_s6 = smul.u32 216, %s179_s30  ;;  %s4965_s10 = sshll.u32 %s175_s9, 8 }
  0x1b   : > { %s8267_s19 = scalar_lea.vmem [#allocation2], %s4965_s10  ;;  %s8332_s28 = scalar_lea.hbm %s8391_s3, %s5526_s21 }
  0x1c   : > { %s6598_s11 = scalar_lea.vmem %s8388_s0, %s6244_s6  ;;  %s4877_s23 = sshll.u32 %s8267_s19, 4  ;;  %s8334_s23 = int_to_ptr.vmem [resolvable:$true] %s4877_s23 }
  0x1d   : > { %v189_v4 = vld [vmem:[%s6598_s11] sm:$0xf]  ;;  %v190_v5 = vld [vmem:[%s6598_s11 + $0x4] sm:$0xf]  ;;  %v223_v6 = vld [vmem:[%s6598_s11 + $0x8] sm:$0x1] }
  0x1e   : > { %v243_v7 = vshrl.u32 %v189_v4, 16  ;;  %v246_v8 = vshll.u32 %v189_v4, 16  ;;  %v252_v9 = vshll.u32 %v190_v5, 16  ;;  %v256_v10 = vshrl.u32 %v190_v5, 16  ;;  %v5153_v11 = vld [vmem:[%s6598_s11 + $0xc] sm:$0xf] }
  0x1f   : > { %v262_v12 = vshll.u32 %v223_v6, 16  ;;  %v6606_v13 = vld [vmem:[%s6598_s11 + $0x10] sm:$0xf]  ;;  %v6609_v14 = vld [vmem:[%s6598_s11 + $0x14] sm:$0x1]  ;;  %v2064_v20 = vshrl.u32 %v5153_v11, 16 }
  0x20   : > { %v245_v15 = vrot.slane %v243_v7, 4  ;;  %v248_v16 = vrot.slane %v246_v8, 5  ;;  %v254_v17 = vrot.slane %v252_v9, 5  ;;  %v258_v18 = vrot.slane %v256_v10, 4  ;;  %v191_v27 = vld [vmem:[%s6598_s11 + $0xc] sm:$0xf] }
  0x21   : > { %v264_v19 = vrot.slane %v262_v12, 5  ;;  %v2067_v21 = vshll.u32 %v5153_v11, 16  ;;  %v2073_v22 = vshll.u32 %v6606_v13, 16  ;;  %v2077_v25 = vshrl.u32 %v6606_v13, 16  ;;  %v192_v32 = vld [vmem:[%s6598_s11 + $0x10] sm:$0xf] }
  0x22   : > { %v249_v23 = vor.u32 %v248_v16, %v245_v15  ;;  %v259_v24 = vor.u32 %v258_v18, %v254_v17  ;;  %v2083_v26 = vshll.u32 %v6609_v14, 16  ;;  %v2066_v29 = vrot.slane %v2064_v20, 4  ;;  %v224_v38 = vld [vmem:[%s6598_s11 + $0x14] sm:$0x1]  ;;  %v5156_v49 = vld [vmem:[%s6598_s11 + $0x18] sm:$0xf] }
  0x23   : > { %v2069_v30 = vrot.slane %v2067_v21, 5  ;;  %v2075_v31 = vrot.slane %v2073_v22, 5  ;;  %v2079_v35 = vrot.slane %v2077_v25, 4  ;;  %v267_v39 = vshrl.u32 %v191_v27, 16  ;;  %v6629_v54 = vld [vmem:[%s6598_s11 + $0x1c] sm:$0xf] }
  0x24   : > { %v250_v33 = vrot.slane %v249_v23, 4  ;;  %v260_v34 = vrot.slane %v259_v24, 4  ;;  %v2085_v37 = vrot.slane %v2083_v26, 5  ;;  %v270_v40 = vshll.u32 %v191_v27, 16  ;;  %v6637_v59 = vld [vmem:[%s6598_s11 + $0x20] sm:$0x1] }
  0x25   : > { %v2070_v36 = vor.u32 %v2069_v30, %v2066_v29  ;;  %v2080_v43 = vor.u32 %v2079_v35, %v2075_v31  ;;  %v276_v44 = vshll.u32 %v192_v32, 16  ;;  %v269_v47 = vrot.slane %v267_v39, 4  ;;  %v193_v10 = vld [vmem:[%s6598_s11 + $0x18] sm:$0xf]  ;;  %v225_v24 = vld [vmem:[%s6598_s11 + $0x20] sm:$0x1] }
  0x26   : > { %v255_v41 = vsel %vm6617_vm2, %v250_v33, %v254_v17  ;;  %v265_v42 = vsel %vm6617_vm2, %v260_v34, %v264_v19  ;;  %v272_v48 = vrot.slane %v270_v40, 5  ;;  %v280_v52 = vshrl.u32 %v192_v32, 16  ;;  %v194_v17 = vld [vmem:[%s6598_s11 + $0x1c] sm:$0xf]  ;;  %v5159_v32 = vld [vmem:[%s6598_s11 + $0x24] sm:$0xf] }
  0x27   : > { %v4969_v45 = vcombine.low %v255_v41, %v265_v42  ;;  %v2071_v46 = vrot.slane %v2070_v36, 4  ;;  %v2081_v50 = vrot.slane %v2080_v43, 4  ;;  %v278_v51 = vrot.slane %v276_v44, 5  ;;  %s8342_s15 = scalar_lea.sflag [#allocation3], %s175_s9  ;;  %s6418_s29 = scalar_lea.vmem %s8334_s23, 4096 }
  0x28   : > { %v286_v53 = vshll.u32 %v224_v38, 16  ;;  %v2811_v56 = vrot.slane %v6606_v13, 5  ;;  %v2814_v57 = vrot.slane %v6609_v14, 5  ;;  %v273_v58 = vor.u32 %v272_v48, %v269_v47  ;;  %v6308_v38 = vld [vmem:[%s8389_s1 + $0x10] sm:$0xff]   ;;  %v6872_v14 = vld [vmem:[%s6598_s11 + $0x7c] sm:$0xf]  ;;  %p6419_p12 = scmp.ne.s32.totalorder %s8334_s23, %s6418_s29 }
  0x29   : > { %5682 = vmatprep.mubr.msk.bf16.mxu1 %vm683_vm3, %v4969_v45  ;;  %v2076_v55 = vsel %vm6617_vm2, %v2071_v46, %v2075_v31  ;;  %v2086_v60 = vsel %vm6617_vm2, %v2081_v50, %v2085_v37  ;;  %v282_v61 = vrot.slane %v280_v52, 4  ;;  %v2088_v63 = vshrl.u32 %v5156_v49, 16  ;;  %v6660_v37 = vld [vmem:[%s6598_s11 + $0x28] sm:$0xf]  ;;  %v6669_v45 = vld [vmem:[%s6598_s11 + $0x2c] sm:$0x1] }
  0x2a   : > { %v288_v62 = vrot.slane %v286_v53, 5  ;;  %v5203_v0 = vcombine.low %v2076_v55, %v2086_v60  ;;  %v274_v1 = vrot.slane %v273_v58, 4  ;;  %v2091_v4 = vshll.u32 %v5156_v49, 16  ;;  %v195_v52 = vld [vmem:[%s6598_s11 + $0x24] sm:$0xf]  ;;  %p6420_p13 = pnand %p6419_p12, %p6561_p4  ;;  %s6498_s30 = smov [#allocation2]  }
  0x2b   : > { %v2097_v5 = vshll.u32 %v6629_v54, 16  ;;  %v283_v6 = vor.u32 %v282_v61, %v278_v51  ;;  %v2090_v7 = vrot.slane %v2088_v63, 4  ;;  %v2101_v8 = vshrl.u32 %v6629_v54, 16  ;;  %v196_v61 = vld [vmem:[%s6598_s11 + $0x28] sm:$0xf]  ;;  %s6422_s4 = sshll.u32 %s6498_s30, 4  ;;  %s6423_s4 = int_to_ptr.vmem [resolvable:$false] %s6422_s4 }
  0x2c   : > { %v2107_v9 = vshll.u32 %v6637_v59, 16  ;;  %5818 = vmatprep.mubr.msk.bf16.mxu0 %vm683_vm3, %v5203_v0  ;;  %v279_v11 = vsel %vm6617_vm2, %v274_v1, %v278_v51  ;;  %v2093_v12 = vrot.slane %v2091_v4, 5  ;;  %v2818_v16 = vrot.slane %v6629_v54, 5  ;;  %p6421_p0 = pneg %p6420_p13  ;;  %s6424_s5 = scalar_lea.vmem %s6423_s4, 8192 }
  0x2d   : > { %v2099_v15 = vrot.slane %v2097_v5, 5  ;;  %v284_v18 = vrot.slane %v283_v6, 4  ;;  %v2103_v19 = vrot.slane %v2101_v8, 4  ;;  %v2821_v21 = vrot.slane %v6637_v59, 5  ;;  %v226_v6 = vld [vmem:[%s6598_s11 + $0x2c] sm:$0x1]  ;;  %p6425_p1 = scmp.lt.s32.totalorder %s8334_s23, %s6423_s4  ;;  %p6426_p2 = scmp.lt.s32.totalorder %s6424_s5, %s6418_s29 }
  0x2e   : > { %v2109_v20 = vrot.slane %v2107_v9, 5  ;;  %v2094_v22 = vor.u32 %v2093_v12, %v2090_v7  ;;  %v6653_v23 = vrot.slane %v2818_v16, 4  ;;  %v291_v25 = vshrl.u32 %v193_v10, 16 }
  0x2f   : > { %v294_v26 = vshll.u32 %v193_v10, 16  ;;  %v289_v27 = vsel %vm6617_vm2, %v284_v18, %v288_v62  ;;  %v2104_v29 = vor.u32 %v2103_v19, %v2099_v15  ;;  %v300_v30 = vshll.u32 %v194_v17, 16  ;;  %v6680_v62 = vld [vmem:[%s8389_s1 + $0x30] sm:$0xff]   ;;  %p6427_p3 = por %p6426_p2, %p6425_p1 }
  0x30   : > { %v304_v31 = vshrl.u32 %v194_v17, 16  ;;  %v4970_v33 = vcombine.low %v279_v11, %v289_v27  ;;  %v2095_v34 = vrot.slane %v2094_v22, 4  ;;  %v293_v35 = vrot.slane %v291_v25, 4  ;;  %v6693_v22 = vld [vmem:[%s6598_s11 + $0x34] sm:$0xf] }
  0x31   : > { %v296_v36 = vrot.slane %v294_v26, 5  ;;  %v2105_v39 = vrot.slane %v2104_v29, 4  ;;  %v302_v40 = vrot.slane %v300_v30, 5  ;;  %v310_v42 = vshll.u32 %v225_v24, 16  ;;  %v6700_v30 = vld [vmem:[%s6598_s11 + $0x38] sm:$0x1]  ;;  %p6428_p5 = pnand %p6427_p3, %p6421_p0 }
  0x32   : > { %v306_v41 = vrot.slane %v304_v31, 4  ;;  %5683 = vmatmul.mubr.msk.bf16.vlgmr.msra.gmra.mrb[0].mxu1 %vm683_vm3, %v4970_v33  ;;  %v2100_v43 = vsel %vm6617_vm2, %v2095_v34, %v2099_v15  ;;  %v2112_v46 = vshrl.u32 %v5159_v32, 16  ;;  %v2115_v47 = vshll.u32 %v5159_v32, 16  ;;  %v5162_v15 = vld [vmem:[%s6598_s11 + $0x30] sm:$0xf] }
  0x33   : > { %v297_v44 = vor.u32 %v296_v36, %v293_v35  ;;  %5715 = vmatpush3.bf16.msra.mxu1 %v6587_v2  ;;  %v2110_v48 = vsel %vm6617_vm2, %v2105_v39, %v2109_v20  ;;  %v312_v50 = vrot.slane %v310_v42, 5  ;;  %v2121_v51 = vshll.u32 %v6660_v37, 16  ;;  %v197_v42 = vld [vmem:[%s6598_s11 + $0x30] sm:$0xf] }
  0x34   : > { %v307_v49 = vor.u32 %v306_v41, %v302_v40  ;;  %v5204_v53 = vcombine.low %v2100_v43, %v2110_v48  ;;  %v2114_v58 = vrot.slane %v2112_v46, 4  ;;  %v2117_v60 = vrot.slane %v2115_v47, 5  ;;  %5748 = vmatprep.subr.bf16.mxu1 %v6308_v38  ;;  %v198_v48 = vld [vmem:[%s6598_s11 + $0x34] sm:$0xf] }
  0x35   : > { %v298_v55 = vrot.slane %v297_v44, 4  ;;  %v2123_v63 = vrot.slane %v2121_v51, 5  ;;  %v2125_v0 = vshrl.u32 %v6660_v37, 16  ;;  %v2131_v1 = vshll.u32 %v6669_v45, 16 }
  0x36   : > { %v308_v2 = vrot.slane %v307_v49, 4  ;;  %5819 = vmatmul.mubr.msk.bf16.vlgmr.msra.gmra.mrb[0].mxu0 %vm683_vm3, %v5204_v53  ;;  %v2118_v5 = vor.u32 %v2117_v60, %v2114_v58  ;;  %v315_v7 = vshrl.u32 %v195_v52, 16  ;;  %v318_v8 = vshll.u32 %v195_v52, 16  ;;  %v227_v53 = vld [vmem:[%s6598_s11 + $0x38] sm:$0x1] }
  0x37   : > { %v303_v4 = vsel %vm6617_vm2, %v298_v55, %v302_v40  ;;  %5851 = vmatpush3.bf16.msra.mxu0 %v6593_v3  ;;  %v2127_v10 = vrot.slane %v2125_v0, 4  ;;  %v2133_v11 = vrot.slane %v2131_v1, 5  ;;  %v324_v12 = vshll.u32 %v196_v61, 16 }
  0x38   : > { %v313_v9 = vsel %vm6617_vm2, %v308_v2, %v312_v50  ;;  %v2119_v18 = vrot.slane %v2118_v5, 4  ;;  %v317_v19 = vrot.slane %v315_v7, 4  ;;  %v320_v20 = vrot.slane %v318_v8, 5  ;;  %5884 = vmatprep.subr.bf16.mxu0 %v6680_v62 }
  0x39   : > { %v4971_v17 = vcombine.low %v303_v4, %v313_v9  ;;  %v2128_v24 = vor.u32 %v2127_v10, %v2123_v63  ;;  %v326_v25 = vrot.slane %v324_v12, 5  ;;  %v328_v26 = vshrl.u32 %v196_v61, 16  ;;  %v5165_v4 = vld [vmem:[%s6598_s11 + $0x3c] sm:$0xf]  ;;  %v6717_v9 = vld [vmem:[%s6598_s11 + $0x40] sm:$0xf] }
  0x3a   : > { %v334_v3 = vshll.u32 %v226_v6, 16  ;;  %v2124_v27 = vsel %vm6617_vm2, %v2119_v18, %v2123_v63  ;;  %v321_v29 = vor.u32 %v320_v20, %v317_v19  ;;  %v2136_v31 = vshrl.u32 %v5162_v15, 16  ;;  %v6722_v20 = vld [vmem:[%s6598_s11 + $0x44] sm:$0x1] }
  0x3b   : > { %5686 = vmatprep.mubr.msk.bf16.mxu1 %vm683_vm3, %v4971_v17  ;;  %v2139_v32 = vshll.u32 %v5162_v15, 16  ;;  %v2129_v33 = vrot.slane %v2128_v24, 4  ;;  %v330_v34 = vrot.slane %v328_v26, 4  ;;  %v2145_v36 = vshll.u32 %v6693_v22, 16 }
  0x3c   : > { %v336_v35 = vrot.slane %v334_v3, 5  ;;  %v322_v38 = vrot.slane %v321_v29, 4  ;;  %v2138_v39 = vrot.slane %v2136_v31, 4  ;;  %v2149_v41 = vshrl.u32 %v6693_v22, 16  ;;  %v199_v29 = vld [vmem:[%s6598_s11 + $0x3c] sm:$0xf] }
  0x3d   : > { %v2141_v40 = vrot.slane %v2139_v32, 5  ;;  %v2134_v43 = vsel %vm6617_vm2, %v2129_v33, %v2133_v11  ;;  %v331_v44 = vor.u32 %v330_v34, %v326_v25  ;;  %v2147_v46 = vrot.slane %v2145_v36, 5 }
  0x3e   : > { %v2155_v47 = vshll.u32 %v6700_v30, 16  ;;  %v5205_v49 = vcombine.low %v2124_v27, %v2134_v43  ;;  %v327_v50 = vsel %vm6617_vm2, %v322_v38, %v326_v25  ;;  %v2151_v52 = vrot.slane %v2149_v41, 4 }
  0x3f   : > { %v2142_v51 = vor.u32 %v2141_v40, %v2138_v39  ;;  %v332_v55 = vrot.slane %v331_v44, 4  ;;  %v339_v60 = vshrl.u32 %v197_v42, 16  ;;  %v342_v61 = vshll.u32 %v197_v42, 16 }
  0x40   : > { %v2157_v58 = vrot.slane %v2155_v47, 5  ;;  %5822 = vmatprep.mubr.msk.bf16.mxu0 %vm683_vm3, %v5205_v49  ;;  %v2152_v63 = vor.u32 %v2151_v52, %v2147_v46  ;;  %v348_v0 = vshll.u32 %v198_v48, 16  ;;  %v352_v1 = vshrl.u32 %v198_v48, 16  ;;  %v228_v49 = vld [vmem:[%s6598_s11 + $0x44] sm:$0x1] }
  0x41   : > { %v2143_v2 = vrot.slane %v2142_v51, 4  ;;  %v337_v5 = vsel %vm6617_vm2, %v332_v55, %v336_v35  ;;  %v341_v6 = vrot.slane %v339_v60, 4  ;;  %v344_v7 = vrot.slane %v342_v61, 5  ;;  %v200_v35 = vld [vmem:[%s6598_s11 + $0x40] sm:$0xf] }
  0x42   : > { %v358_v8 = vshll.u32 %v227_v53, 16  ;;  %v4972_v10 = vcombine.low %v327_v50, %v337_v5  ;;  %v2153_v12 = vrot.slane %v2152_v63, 4  ;;  %v350_v15 = vrot.slane %v348_v0, 5  ;;  %v5168_v51 = vld [vmem:[%s6598_s11 + $0x48] sm:$0xf] }
  0x43   : > { %v2148_v11 = vsel %vm6617_vm2, %v2143_v2, %v2147_v46  ;;  %v345_v17 = vor.u32 %v344_v7, %v341_v6  ;;  %v354_v18 = vrot.slane %v352_v1, 4  ;;  %v2160_v24 = vshrl.u32 %v5165_v4, 16  ;;  %v6740_v60 = vld [vmem:[%s6598_s11 + $0x4c] sm:$0xf] }
  0x44   : > { %v360_v19 = vrot.slane %v358_v8, 5  ;;  %5687 = vmatmul.mubr.msk.bf16.gmra.mrb[4].mxu1 %vm683_vm3, %v4972_v10  ;;  %v2158_v25 = vsel %vm6617_vm2, %v2153_v12, %v2157_v58  ;;  %v2163_v26 = vshll.u32 %v5165_v4, 16  ;;  %v2169_v3 = vshll.u32 %v6717_v9, 16  ;;  %v6748_v10 = vld [vmem:[%s6598_s11 + $0x50] sm:$0x1] }
  0x45   : > { %v2173_v27 = vshrl.u32 %v6717_v9, 16  ;;  %v5206_v31 = vcombine.low %v2148_v11, %v2158_v25  ;;  %v346_v32 = vrot.slane %v345_v17, 4  ;;  %v355_v33 = vor.u32 %v354_v18, %v350_v15  ;;  %v6755_v25 = vld [vmem:[%s6598_s11 + $0x4c] sm:$0xf] }
  0x46   : > { %v2162_v34 = vrot.slane %v2160_v24, 4  ;;  %v2165_v36 = vrot.slane %v2163_v26, 5  ;;  %v2171_v38 = vrot.slane %v2169_v3, 5  ;;  %v2179_v40 = vshll.u32 %v6722_v20, 16 }
  0x47   : > { %v2175_v39 = vrot.slane %v2173_v27, 4  ;;  %5823 = vmatmul.mubr.msk.bf16.gmra.mrb[4].mxu0 %vm683_vm3, %v5206_v31  ;;  %v351_v41 = vsel %vm6617_vm2, %v346_v32, %v350_v15  ;;  %v356_v42 = vrot.slane %v355_v33, 4  ;;  %v363_v43 = vshrl.u32 %v199_v29, 16  ;;  %v6752_v15 = vld [vmem:[%s6598_s11 + $0x48] sm:$0xf] }
  0x48   : > { %v366_v44 = vshll.u32 %v199_v29, 16  ;;  %v2166_v46 = vor.u32 %v2165_v36, %v2162_v34  ;;  %v2181_v48 = vrot.slane %v2179_v40, 5  ;;  %v372_v50 = vshll.u32 %v200_v35, 16  ;;  %v229_v34 = vld [vmem:[%s6598_s11 + $0x50] sm:$0x1] }
  0x49   : > { %v2176_v47 = vor.u32 %v2175_v39, %v2171_v38  ;;  %v361_v52 = vsel %vm6617_vm2, %v356_v42, %v360_v19  ;;  %v365_v53 = vrot.slane %v363_v43, 4  ;;  %v376_v58 = vshrl.u32 %v200_v35, 16 }
  0x4a   : > { %v368_v55 = vrot.slane %v366_v44, 5  ;;  %v4973_v61 = vcombine.low %v351_v41, %v361_v52  ;;  %v2167_v2 = vrot.slane %v2166_v46, 4  ;;  %v374_v0 = vrot.slane %v372_v50, 5  ;;  %v5171_v41 = vld [vmem:[%s6598_s11 + $0x54] sm:$0xf] }
  0x4b   : > { %v2177_v63 = vrot.slane %v2176_v47, 4  ;;  %v378_v4 = vrot.slane %v376_v58, 4  ;;  %v382_v5 = vshll.u32 %v228_v49, 16  ;;  %v2184_v6 = vshrl.u32 %v5168_v51, 16 }
  0x4c   : > { %v369_v1 = vor.u32 %v368_v55, %v365_v53  ;;  %5690 = vmatprep.mubr.msk.bf16.mxu1 %vm683_vm3, %v4973_v61  ;;  %v2172_v7 = vsel %vm6617_vm2, %v2167_v2, %v2171_v38  ;;  %v2187_v11 = vshll.u32 %v5168_v51, 16  ;;  %v2193_v12 = vshll.u32 %v6740_v60, 16  ;;  %v6771_v51 = vld [vmem:[%s6598_s11 + $0x58] sm:$0xf] }
  0x4d   : > { %v2182_v8 = vsel %vm6617_vm2, %v2177_v63, %v2181_v48  ;;  %v379_v19 = vor.u32 %v378_v4, %v374_v0  ;;  %v384_v24 = vrot.slane %v382_v5, 5  ;;  %v2186_v26 = vrot.slane %v2184_v6, 4 }
  0x4e   : > { %v5207_v17 = vcombine.low %v2172_v7, %v2182_v8  ;;  %v370_v18 = vrot.slane %v369_v1, 4  ;;  %v2189_v3 = vrot.slane %v2187_v11, 5  ;;  %v2195_v27 = vrot.slane %v2193_v12, 5  ;;  %v6781_v8 = vld [vmem:[%s6598_s11 + $0x54] sm:$0xf] }
  0x4f   : > { %v2197_v29 = vshrl.u32 %v6740_v60, 16  ;;  %v380_v32 = vrot.slane %v379_v19, 4  ;;  %v2203_v33 = vshll.u32 %v6748_v10, 16  ;;  %v387_v35 = vshrl.u32 %v6752_v15, 16  ;;  %v6787_v19 = vld [vmem:[%s6598_s11 + $0x58] sm:$0xf] }
  0x50   : > { %5826 = vmatprep.mubr.msk.bf16.mxu0 %vm683_vm3, %v5207_v17  ;;  %v375_v31 = vsel %vm6617_vm2, %v370_v18, %v374_v0  ;;  %v2190_v36 = vor.u32 %v2189_v3, %v2186_v26  ;;  %v390_v39 = vshll.u32 %v6752_v15, 16  ;;  %v396_v40 = vshll.u32 %v6755_v25, 16  ;;  %v6777_v0 = vld [vmem:[%s6598_s11 + $0x5c] sm:$0x1] }
  0x51   : > { %v2199_v38 = vrot.slane %v2197_v29, 4  ;;  %v385_v42 = vsel %vm6617_vm2, %v380_v32, %v384_v24  ;;  %v2205_v43 = vrot.slane %v2203_v33, 5  ;;  %v389_v44 = vrot.slane %v387_v35, 4  ;;  %v230_v33 = vld [vmem:[%s6598_s11 + $0x5c] sm:$0x1] }
  0x52   : > { %v400_v46 = vshrl.u32 %v6755_v25, 16  ;;  %v4974_v47 = vcombine.low %v375_v31, %v385_v42  ;;  %v2191_v48 = vrot.slane %v2190_v36, 4  ;;  %v392_v50 = vrot.slane %v390_v39, 5 }
  0x53   : > { %v2200_v49 = vor.u32 %v2199_v38, %v2195_v27  ;;  %v398_v52 = vrot.slane %v396_v40, 5  ;;  %v406_v55 = vshll.u32 %v229_v34, 16  ;;  %v2208_v58 = vshrl.u32 %v5171_v41, 16  ;;  %v5174_v40 = vld [vmem:[%s6598_s11 + $0x60] sm:$0xf] }
  0x54   : > { %v402_v53 = vrot.slane %v400_v46, 4  ;;  %5691 = vmatmul.mubr.msk.bf16.gmra.mrb[8].mxu1 %vm683_vm3, %v4974_v47  ;;  %v2196_v61 = vsel %vm6617_vm2, %v2191_v48, %v2195_v27  ;;  %v393_v63 = vor.u32 %v392_v50, %v389_v44  ;;  %v2211_v1 = vshll.u32 %v5171_v41, 16  ;;  %v6801_v46 = vld [vmem:[%s6598_s11 + $0x64] sm:$0xf] }
  0x55   : > { %v2201_v2 = vrot.slane %v2200_v49, 4  ;;  %v408_v5 = vrot.slane %v406_v55, 5  ;;  %v2210_v6 = vrot.slane %v2208_v58, 4  ;;  %v2217_v7 = vshll.u32 %v6771_v51, 16  ;;  %v6808_v55 = vld [vmem:[%s6598_s11 + $0x68] sm:$0x1] }
  0x56   : > { %v403_v4 = vor.u32 %v402_v53, %v398_v52  ;;  %v394_v12 = vrot.slane %v393_v63, 4  ;;  %v2213_v17 = vrot.slane %v2211_v1, 5  ;;  %v2221_v18 = vshrl.u32 %v6771_v51, 16 }
  0x57   : > { %v2206_v11 = vsel %vm6617_vm2, %v2201_v2, %v2205_v43  ;;  %v2219_v3 = vrot.slane %v2217_v7, 5  ;;  %v2227_v27 = vshll.u32 %v6777_v0, 16  ;;  %v411_v34 = vshrl.u32 %v6781_v8, 16 }
  0x58   : > { %v5208_v24 = vcombine.low %v2196_v61, %v2206_v11  ;;  %v404_v26 = vrot.slane %v403_v4, 4  ;;  %v399_v29 = vsel %vm6617_vm2, %v394_v12, %v398_v52  ;;  %v2214_v31 = vor.u32 %v2213_v17, %v2210_v6  ;;  %v6818_v17 = vld [vmem:[%s6598_s11 + $0x64] sm:$0xf] }
  0x59   : > { %v2223_v32 = vrot.slane %v2221_v18, 4  ;;  %v2229_v36 = vrot.slane %v2227_v27, 5  ;;  %v414_v38 = vshll.u32 %v6781_v8, 16  ;;  %v420_v39 = vshll.u32 %v6787_v19, 16 }
  0x5a   : > { %5827 = vmatmul.mubr.msk.bf16.gmra.mrb[8].mxu0 %vm683_vm3, %v5208_v24  ;;  %v409_v35 = vsel %vm6617_vm2, %v404_v26, %v408_v5  ;;  %v2215_v42 = vrot.slane %v2214_v31, 4  ;;  %v413_v44 = vrot.slane %v411_v34, 4  ;;  %v424_v49 = vshrl.u32 %v6787_v19, 16  ;;  %v6812_v5 = vld [vmem:[%s6598_s11 + $0x60] sm:$0xf] }
  0x5b   : > { %v4975_v41 = vcombine.low %v399_v29, %v409_v35  ;;  %v2224_v43 = vor.u32 %v2223_v32, %v2219_v3  ;;  %v416_v47 = vrot.slane %v414_v38, 5  ;;  %v422_v48 = vrot.slane %v420_v39, 5  ;;  %v231_v35 = vld [vmem:[%s6598_s11 + $0x68] sm:$0x1] }
  0x5c   : > { %v430_v50 = vshll.u32 %v230_v33, 16  ;;  %v2220_v52 = vsel %vm6617_vm2, %v2215_v42, %v2219_v3  ;;  %v2232_v58 = vshrl.u32 %v5174_v40, 16  ;;  %v2235_v61 = vshll.u32 %v5174_v40, 16 }
  0x5d   : > { %5694 = vmatprep.mubr.msk.bf16.mxu1 %vm683_vm3, %v4975_v41  ;;  %v2225_v53 = vrot.slane %v2224_v43, 4  ;;  %v417_v2 = vor.u32 %v416_v47, %v413_v44  ;;  %v426_v63 = vrot.slane %v424_v49, 4  ;;  %v2241_v4 = vshll.u32 %v6801_v46, 16  ;;  %v5236_v43 = vld [vmem:[%s6598_s11 + $0xc] sm:$0xe] }
  0x5e   : > { %v432_v1 = vrot.slane %v430_v50, 5  ;;  %v2234_v7 = vrot.slane %v2232_v58, 4  ;;  %v2237_v11 = vrot.slane %v2235_v61, 5  ;;  %v2245_v12 = vshrl.u32 %v6801_v46, 16 }
  0x5f   : > { %v2230_v6 = vsel %vm6617_vm2, %v2225_v53, %v2229_v36  ;;  %v418_v24 = vrot.slane %v417_v2, 4  ;;  %v427_v26 = vor.u32 %v426_v63, %v422_v48  ;;  %v2243_v3 = vrot.slane %v2241_v4, 5 }
  0x60   : > { %v5209_v18 = vcombine.low %v2220_v52, %v2230_v6  ;;  %v2238_v27 = vor.u32 %v2237_v11, %v2234_v7  ;;  %v2247_v29 = vrot.slane %v2245_v12, 4  ;;  %v2251_v31 = vshll.u32 %v6808_v55, 16  ;;  %v6846_v7 = vld [vmem:[%s6598_s11 + $0x70] sm:$0xf] }
  0x61   : > { %v435_v32 = vshrl.u32 %v6812_v5, 16  ;;  %v423_v33 = vsel %vm6617_vm2, %v418_v24, %v422_v48  ;;  %v428_v34 = vrot.slane %v427_v26, 4  ;;  %v438_v36 = vshll.u32 %v6812_v5, 16  ;;  %v6833_v48 = vld [vmem:[%s6598_s11 + $0x6c] sm:$0xf] }
  0x62   : > { %5830 = vmatprep.mubr.msk.bf16.mxu0 %vm683_vm3, %v5209_v18  ;;  %v444_v38 = vshll.u32 %v6818_v17, 16  ;;  %v2239_v39 = vrot.slane %v2238_v27, 4  ;;  %v2248_v40 = vor.u32 %v2247_v29, %v2243_v3  ;;  %v2253_v41 = vrot.slane %v2251_v31, 5  ;;  %v232_v31 = vld [vmem:[%s6598_s11 + $0x74] sm:$0x1] }
  0x63   : > { %v437_v42 = vrot.slane %v435_v32, 4  ;;  %v433_v44 = vsel %vm6617_vm2, %v428_v34, %v432_v1  ;;  %v440_v47 = vrot.slane %v438_v36, 5  ;;  %v448_v50 = vshrl.u32 %v6818_v17, 16  ;;  %v5237_v32 = vld [vmem:[%s6598_s11 + $0x18] sm:$0xe] }
  0x64   : > { %v446_v49 = vrot.slane %v444_v38, 5  ;;  %v4976_v52 = vcombine.low %v423_v33, %v433_v44  ;;  %v2244_v53 = vsel %vm6617_vm2, %v2239_v39, %v2243_v3  ;;  %v2249_v58 = vrot.slane %v2248_v40, 4  ;;  %v6865_v38 = vld [vmem:[%s6598_s11 + $0x78] sm:$0xf] }
  0x65   : > { %v454_v61 = vshll.u32 %v231_v35, 16  ;;  %v441_v63 = vor.u32 %v440_v47, %v437_v42  ;;  %v450_v1 = vrot.slane %v448_v50, 4  ;;  %v5252_v4 = vrot.slane %v5236_v43, 9  ;;  %v5238_v47 = vld [vmem:[%s6598_s11 + $0x24] sm:$0xe] }
  0x66   : > { %v2813_v6 = vrot.slane %v2811_v56, 4  ;;  %5695 = vmatmul.mubr.msk.bf16.gmra.mrb[12].mxu1 %vm683_vm3, %v4976_v52  ;;  %v2254_v11 = vsel %vm6617_vm2, %v2249_v58, %v2253_v41  ;;  %v459_v18 = vshrl.u32 %v6833_v48, 16  ;;  %v462_v24 = vshll.u32 %v6833_v48, 16  ;;  %v233_v41 = vld [vmem:[%s6598_s11 + $0x80] sm:$0x1] }
  0x67   : > { %v456_v12 = vrot.slane %v454_v61, 5  ;;  %v5210_v26 = vcombine.low %v2244_v53, %v2254_v11  ;;  %v442_v3 = vrot.slane %v441_v63, 4  ;;  %v451_v27 = vor.u32 %v450_v1, %v446_v49 }
  0x68   : > { %v2812_v29 = vsel %vm6839_vm6, %v5252_v4, %v2811_v56  ;;  %v2815_v33 = vsel %vm6839_vm6, %v2813_v6, %v2814_v57  ;;  %v461_v34 = vrot.slane %v459_v18, 4  ;;  %v464_v35 = vrot.slane %v462_v24, 5  ;;  %v6899_v24 = vld [vmem:[%s6598_s11 + $0x88] sm:$0xf] }
  0x69   : > { %v468_v36 = vshll.u32 %v6846_v7, 16  ;;  %5831 = vmatmul.mubr.msk.bf16.gmra.mrb[12].mxu0 %vm683_vm3, %v5210_v26  ;;  %v447_v13 = vsel %vm6617_vm2, %v442_v3, %v446_v49  ;;  %v452_v56 = vrot.slane %v451_v27, 4  ;;  %v5270_v39 = vcombine.low %v2812_v29, %v2815_v33 }
  0x6a   : > { %v472_v40 = vshrl.u32 %v6846_v7, 16  ;;  %v465_v57 = vor.u32 %v464_v35, %v461_v34  ;;  %v478_v43 = vshll.u32 %v232_v31, 16  ;;  %v5253_v44 = vrot.slane %v5237_v32, 9  ;;  %v234_v35 = vld [vmem:[%s6598_s11 + $0x8c] sm:$0x1] }
  0x6b   : > { %v470_v42 = vrot.slane %v468_v36, 5  ;;  %v457_v50 = vsel %vm6617_vm2, %v452_v56, %v456_v12  ;;  %5852 = vmatprep.mubr.msk.bf16.mxu0 %vm683_vm3, %v5270_v39  ;;  %v2822_v49 = vsel %vm6839_vm6, %v6653_v23, %v2821_v21  ;;  %v483_v53 = vshrl.u32 %v6865_v38, 16  ;;  %v6891_v12 = vld [vmem:[%s6598_s11 + $0x84] sm:$0xf] }
  0x6c   : > { %v474_v52 = vrot.slane %v472_v40, 4  ;;  %v4977_v58 = vcombine.low %v447_v13, %v457_v50  ;;  %v466_v61 = vrot.slane %v465_v57, 4  ;;  %v480_v63 = vrot.slane %v478_v43, 5  ;;  %v5239_v40 = vld [vmem:[%s6598_s11 + $0x30] sm:$0xe] }
  0x6d   : > { %v2819_v1 = vsel %vm6839_vm6, %v5253_v44, %v2818_v16  ;;  %v485_v11 = vrot.slane %v483_v53, 4  ;;  %v486_v59 = vshll.u32 %v6865_v38, 16  ;;  %v492_v23 = vshll.u32 %v6872_v14, 16  ;;  %v6904_v16 = vld [vmem:[%s8389_s1 + $0x38] sm:$0xff]   ;;  %v6923_v50 = vld [vmem:[%s6598_s11 + $0x90] sm:$0xf] }
  0x6e   : > { %v475_v4 = vor.u32 %v474_v52, %v470_v42  ;;  %v5271_v6 = vcombine.low %v2819_v1, %v2822_v49  ;;  %5698 = vmatprep.mubr.msk.bf16.mxu1 %vm683_vm3, %v4977_v58  ;;  %v471_v21 = vsel %vm6617_vm2, %v466_v61, %v470_v42  ;;  %v496_v54 = vshrl.u32 %v6872_v14, 16  ;;  %v6928_v58 = vld [vmem:[%s6598_s11 + $0x94] sm:$0xf] }
  0x6f   : > { %v502_v18 = vshll.u32 %v233_v41, 16  ;;  %v488_v3 = vrot.slane %v486_v59, 5  ;;  %v5254_v27 = vrot.slane %v5238_v47, 9  ;;  %v2825_v29 = vrot.slane %v6660_v37, 5 }
  0x70   : > { %v476_v26 = vrot.slane %v475_v4, 4  ;;  %v494_v31 = vrot.slane %v492_v23, 5  ;;  %v498_v32 = vrot.slane %v496_v54, 4  ;;  %v2828_v34 = vrot.slane %v6669_v45, 5  ;;  %v235_v23 = vld [vmem:[%s6598_s11 + $0x98] sm:$0x1] }
  0x71   : > { %v504_v33 = vrot.slane %v502_v18, 5  ;;  %5853 = vmatmul.mubr.msk.bf16.vlgmr.msra.gmra.mrb[0].mxu0 %vm683_vm3, %v5271_v6  ;;  %v489_v13 = vor.u32 %v488_v3, %v485_v11  ;;  %v2826_v56 = vsel %vm6839_vm6, %v5254_v27, %v2825_v29  ;;  %v2827_v39 = vrot.slane %v2825_v29, 4  ;;  %v5240_v27 = vld [vmem:[%s6598_s11 + $0x3c] sm:$0xe] }
  0x72   : > { %v481_v36 = vsel %vm6617_vm2, %v476_v26, %v480_v63  ;;  %5885 = vmatpush3.bf16.msra.mxu0 %v6680_v62  ;;  %v499_v37 = vor.u32 %v498_v32, %v494_v31  ;;  %v507_v45 = vshrl.u32 %v6891_v12, 16  ;;  %v510_v57 = vshll.u32 %v6891_v12, 16 }
  0x73   : > { %v4978_v41 = vcombine.low %v471_v21, %v481_v36  ;;  %v490_v42 = vrot.slane %v489_v13, 4  ;;  %v2829_v43 = vsel %vm6839_vm6, %v2827_v39, %v2828_v34  ;;  %v516_v44 = vshll.u32 %v6899_v24, 16  ;;  %5918 = vmatprep.subr.bf16.mxu0 %v6904_v16 }
  0x74   : > { %v520_v47 = vshrl.u32 %v6899_v24, 16  ;;  %v500_v62 = vrot.slane %v499_v37, 4  ;;  %v5272_v52 = vcombine.low %v2826_v56, %v2829_v43  ;;  %v509_v49 = vrot.slane %v507_v45, 4 }
  0x75   : > { %5699 = vmatmul.mubr.msk.bf16.gmra.mrb[16].mxu1 %vm683_vm3, %v4978_v41  ;;  %v512_v53 = vrot.slane %v510_v57, 5  ;;  %v495_v61 = vsel %vm6617_vm2, %v490_v42, %v494_v31  ;;  %v518_v63 = vrot.slane %v516_v44, 5  ;;  %v526_v4 = vshll.u32 %v234_v35, 16  ;;  %v6956_v42 = vld [vmem:[%s6598_s11 + $0xa0] sm:$0xf] }
  0x76   : > { %v522_v1 = vrot.slane %v520_v47, 4  ;;  %v505_v6 = vsel %vm6617_vm2, %v500_v62, %v504_v33  ;;  %5856 = vmatprep.mubr.msk.bf16.mxu0 %vm683_vm3, %v5272_v52  ;;  %v5255_v59 = vrot.slane %v5239_v40, 9  ;;  %v2832_v21 = vrot.slane %v6693_v22, 5  ;;  %v6951_v40 = vld [vmem:[%s6598_s11 + $0x9c] sm:$0xf] }
  0x77   : > { %v513_v11 = vor.u32 %v512_v53, %v509_v49  ;;  %v4979_v54 = vcombine.low %v495_v61, %v505_v6  ;;  %v528_v26 = vrot.slane %v526_v4, 5  ;;  %v2835_v3 = vrot.slane %v6700_v30, 5  ;;  %v236_v52 = vld [vmem:[%s6598_s11 + $0xa4] sm:$0x1] }
  0x78   : > { %v523_v18 = vor.u32 %v522_v1, %v518_v63  ;;  %v2833_v31 = vsel %vm6839_vm6, %v5255_v59, %v2832_v21  ;;  %v2834_v32 = vrot.slane %v2832_v21, 4  ;;  %v531_v33 = vshrl.u32 %v6923_v50, 16  ;;  %v5241_v59 = vld [vmem:[%s6598_s11 + $0x48] sm:$0xe] }
  0x79   : > { %v514_v29 = vrot.slane %v513_v11, 4  ;;  %5702 = vmatprep.mubr.msk.bf16.mxu1 %vm683_vm3, %v4979_v54  ;;  %v534_v22 = vshll.u32 %v6923_v50, 16  ;;  %v540_v35 = vshll.u32 %v6928_v58, 16  ;;  %v544_v36 = vshrl.u32 %v6928_v58, 16 }
  0x7a   : > { %v524_v34 = vrot.slane %v523_v18, 4  ;;  %v2836_v13 = vsel %vm6839_vm6, %v2834_v32, %v2835_v3  ;;  %v533_v56 = vrot.slane %v531_v33, 4  ;;  %v550_v39 = vshll.u32 %v235_v23, 16  ;;  %v6975_v33 = vld [vmem:[%s6598_s11 + $0xa8] sm:$0xf] }
  0x7b   : > { %v519_v30 = vsel %vm6617_vm2, %v514_v29, %v518_v63  ;;  %v5273_v37 = vcombine.low %v2833_v31, %v2836_v13  ;;  %v536_v45 = vrot.slane %v534_v22, 5  ;;  %v542_v57 = vrot.slane %v540_v35, 5 }
  0x7c   : > { %v529_v41 = vsel %vm6617_vm2, %v524_v34, %v528_v26  ;;  %v546_v44 = vrot.slane %v544_v36, 4  ;;  %v552_v47 = vrot.slane %v550_v39, 5  ;;  %v5256_v62 = vrot.slane %v5240_v27, 9 }
  0x7d   : > { %v4980_v43 = vcombine.low %v519_v30, %v529_v41  ;;  %5857 = vmatmul.mubr.msk.bf16.gmra.mrb[4].mxu0 %vm683_vm3, %v5273_v37  ;;  %v537_v49 = vor.u32 %v536_v45, %v533_v56  ;;  %v2839_v53 = vrot.slane %v6717_v9, 5  ;;  %v2842_v61 = vrot.slane %v6722_v20, 5  ;;  %v6980_v30 = vld [vmem:[%s6598_s11 + $0xac] sm:$0xf]  ;;  %v237_v37 = vld [vmem:[%s6598_s11 + $0xb0] sm:$0x1] }
  0x7e   : > { %v555_v63 = vshrl.u32 %v6951_v40, 16  ;;  %v547_v1 = vor.u32 %v546_v44, %v542_v57  ;;  %v558_v4 = vshll.u32 %v6951_v40, 16  ;;  %v564_v6 = vshll.u32 %v6956_v42, 16  ;;  %v5242_v45 = vld [vmem:[%s6598_s11 + $0x54] sm:$0xe] }
  0x7f   : > { %5703 = vmatmul.mubr.msk.bf16.gmra.mrb[20].mxu1 %vm683_vm3, %v4980_v43  ;;  %v568_v11 = vshrl.u32 %v6956_v42, 16  ;;  %v538_v21 = vrot.slane %v537_v49, 4  ;;  %v2840_v23 = vsel %vm6839_vm6, %v5256_v62, %v2839_v53  ;;  %v2841_v9 = vrot.slane %v2839_v53, 4  ;;  %v6990_v62 = vld [vmem:[%s6598_s11 + $0xb4] sm:$0xf] }
  0x80   : > { %v557_v20 = vrot.slane %v555_v63, 4  ;;  %v548_v54 = vrot.slane %v547_v1, 4  ;;  %v560_v18 = vrot.slane %v558_v4, 5  ;;  %v566_v26 = vrot.slane %v564_v6, 5  ;;  %v7002_v4 = vld [vmem:[%s6598_s11 + $0xb8] sm:$0xf] }
  0x81   : > { %v570_v3 = vrot.slane %v568_v11, 4  ;;  %v543_v27 = vsel %vm6617_vm2, %v538_v21, %v542_v57  ;;  %v2843_v29 = vsel %vm6839_vm6, %v2841_v9, %v2842_v61  ;;  %v574_v31 = vshll.u32 %v236_v52, 16 }
  0x82   : > { %v5257_v32 = vrot.slane %v5241_v59, 9  ;;  %v553_v34 = vsel %vm6617_vm2, %v548_v54, %v552_v47  ;;  %v5274_v22 = vcombine.low %v2840_v23, %v2843_v29  ;;  %v561_v35 = vor.u32 %v560_v18, %v557_v20  ;;  %v238_v18 = vld [vmem:[%s6598_s11 + $0xbc] sm:$0x1] }
  0x83   : > { %v571_v36 = vor.u32 %v570_v3, %v566_v26  ;;  %v4981_v13 = vcombine.low %v543_v27, %v553_v34  ;;  %v576_v56 = vrot.slane %v574_v31, 5  ;;  %v2846_v39 = vrot.slane %v6740_v60, 5  ;;  %v5243_v31 = vld [vmem:[%s6598_s11 + $0x60] sm:$0xe] }
  0x84   : > { %v2849_v41 = vrot.slane %v6748_v10, 5  ;;  %5860 = vmatprep.mubr.msk.bf16.mxu0 %vm683_vm3, %v5274_v22  ;;  %v562_v57 = vrot.slane %v561_v35, 4  ;;  %v579_v44 = vshrl.u32 %v6975_v33, 16  ;;  %v582_v47 = vshll.u32 %v6975_v33, 16 }
  0x85   : > { %v572_v43 = vrot.slane %v571_v36, 4  ;;  %5706 = vmatprep.mubr.msk.bf16.mxu1 %vm683_vm3, %v4981_v13  ;;  %v2847_v60 = vsel %vm6839_vm6, %v5257_v32, %v2846_v39  ;;  %v2848_v52 = vrot.slane %v2846_v39, 4  ;;  %v588_v10 = vshll.u32 %v6980_v30, 16  ;;  %v5244_v36 = vld [vmem:[%s6598_s11 + $0x6c] sm:$0xe] }
  0x86   : > { %v592_v49 = vshrl.u32 %v6980_v30, 16  ;;  %v567_v53 = vsel %vm6617_vm2, %v562_v57, %v566_v26  ;;  %v581_v63 = vrot.slane %v579_v44, 4  ;;  %v584_v1 = vrot.slane %v582_v47, 5 }
  0x87   : > { %v577_v61 = vsel %vm6617_vm2, %v572_v43, %v576_v56  ;;  %v2850_v11 = vsel %vm6839_vm6, %v2848_v52, %v2849_v41  ;;  %v590_v59 = vrot.slane %v588_v10, 5  ;;  %v598_v20 = vshll.u32 %v237_v37, 16  ;;  %v5179_v52 = vld [vmem:[%s6598_s11 + $0x74] sm:$0x1] }
  0x88   : > { %v4982_v6 = vcombine.low %v567_v53, %v577_v61  ;;  %v594_v21 = vrot.slane %v592_v49, 4  ;;  %v5275_v23 = vcombine.low %v2847_v60, %v2850_v11  ;;  %v585_v9 = vor.u32 %v584_v1, %v581_v63  ;;  %v5178_v60 = vld [vmem:[%s6598_s11 + $0x70] sm:$0xf] }
  0x89   : > { %v5258_v54 = vrot.slane %v5242_v45, 9  ;;  %v2853_v3 = vrot.slane %v6771_v51, 5  ;;  %v2856_v27 = vrot.slane %v6777_v0, 5  ;;  %v603_v29 = vshrl.u32 %v6990_v62, 16 }
  0x8a   : > { %5707 = vmatmul.mubr.msk.bf16.gmra.mrb[24].mxu1 %vm683_vm3, %v4982_v6  ;;  %v595_v26 = vor.u32 %v594_v21, %v590_v59  ;;  %5861 = vmatmul.mubr.msk.bf16.gmra.mrb[8].mxu0 %vm683_vm3, %v5275_v23  ;;  %v586_v32 = vrot.slane %v585_v9, 4  ;;  %v600_v34 = vrot.slane %v598_v20, 5  ;;  %v606_v22 = vshll.u32 %v6990_v62, 16 }
  0x8b   : > { %v612_v35 = vshll.u32 %v7002_v4, 16  ;;  %v2854_v51 = vsel %vm6839_vm6, %v5258_v54, %v2853_v3  ;;  %v2855_v56 = vrot.slane %v2853_v3, 4  ;;  %v605_v0 = vrot.slane %v603_v29, 4  ;;  %v5245_v54 = vld [vmem:[%s6598_s11 + $0x78] sm:$0xe] }
  0x8c   : > { %v596_v13 = vrot.slane %v595_v26, 4  ;;  %v591_v39 = vsel %vm6617_vm2, %v586_v32, %v590_v59  ;;  %v608_v41 = vrot.slane %v606_v22, 5  ;;  %v616_v45 = vshrl.u32 %v7002_v4, 16  ;;  %v6359_v29 = vld [vmem:[%s6598_s11] sm:$0xf] }
  0x8d   : > { %v614_v37 = vrot.slane %v612_v35, 5  ;;  %v2857_v43 = vsel %vm6839_vm6, %v2855_v56, %v2856_v27  ;;  %v622_v44 = vshll.u32 %v238_v18, 16  ;;  %v5259_v47 = vrot.slane %v5243_v31, 9  ;;  %v7042_v31 = vld [vmem:[%s6598_s11 + $0x4] sm:$0xf] }
  0x8e   : > { %v601_v57 = vsel %vm6617_vm2, %v596_v13, %v600_v34  ;;  %v5276_v49 = vcombine.low %v2854_v51, %v2857_v43  ;;  %v609_v53 = vor.u32 %v608_v41, %v605_v0  ;;  %v618_v61 = vrot.slane %v616_v45, 4  ;;  %v7046_v34 = vld [vmem:[%s6598_s11 + $0x7c] sm:$0xf]  ;;  %v7049_v22 = vld [vmem:[%s6598_s11 + $0x80] sm:$0x1] }
  0x8f   : > { %v4983_v10 = vcombine.low %v591_v39, %v601_v57  ;;  %v624_v63 = vrot.slane %v622_v44, 5  ;;  %v2860_v1 = vrot.slane %v6801_v46, 5  ;;  %v2863_v6 = vrot.slane %v6808_v55, 5  ;;  %v5246_v35 = vld [vmem:[%s6598_s11 + $0x84] sm:$0xe] }
  0x90   : > { %v5260_v11 = vrot.slane %v5244_v36, 9  ;;  %5864 = vmatprep.mubr.msk.bf16.mxu0 %vm683_vm3, %v5276_v49  ;;  %v610_v59 = vrot.slane %v609_v53, 4  ;;  %v619_v21 = vor.u32 %v618_v61, %v614_v37  ;;  %v2867_v23 = vrot.slane %v5178_v60, 5  ;;  %v5184_v0 = vld [vmem:[%s6598_s11 + $0x88] sm:$0xf] }
  0x91   : > { %5710 = vmatprep.mubr.msk.bf16.mxu1 %vm683_vm3, %v4983_v10  ;;  %v2870_v9 = vrot.slane %v5179_v52, 5  ;;  %v2861_v20 = vsel %vm6839_vm6, %v5259_v47, %v2860_v1  ;;  %v2862_v46 = vrot.slane %v2860_v1, 4  ;;  %v5002_v32 = vcombine.low %v6359_v29, %v7042_v31  ;;  %v5185_v39 = vld [vmem:[%s6598_s11 + $0x8c] sm:$0x1]  ;;  %v5187_v45 = vld [vmem:[%s6598_s11 + $0x94] sm:$0xf] }
  0x92   : > { %v615_v55 = vsel %vm6617_vm2, %v610_v59, %v614_v37  ;;  %v620_v18 = vrot.slane %v619_v21, 4  ;;  %v2868_v26 = vsel %vm6839_vm6, %v5260_v11, %v2867_v23  ;;  %v2869_v3 = vrot.slane %v2867_v23, 4  ;;  %v5188_v52 = vld [vmem:[%s6598_s11 + $0x98] sm:$0x1]  ;;  %v5247_v10 = vld [vmem:[%s6598_s11 + $0x90] sm:$0xe] }
  0x93   : > { %v2864_v27 = vsel %vm6839_vm6, %v2862_v46, %v2863_v6  ;;  %v5261_v56 = vrot.slane %v5245_v54, 9  ;;  %v2874_v57 = vrot.slane %v7046_v34, 5  ;;  %v2877_v43 = vrot.slane %v7049_v22, 5  ;;  %v5191_v11 = vld [vmem:[%s6598_s11 + $0xa4] sm:$0x1] }
  0x94   : > { %v625_v36 = vsel %vm6617_vm2, %v620_v18, %v624_v63  ;;  %v5277_v13 = vcombine.low %v2861_v20, %v2864_v27  ;;  %v2871_v51 = vsel %vm6839_vm6, %v2869_v3, %v2870_v9  ;;  %v5262_v44 = vrot.slane %v5246_v35, 9  ;;  %v5190_v63 = vld [vmem:[%s6598_s11 + $0xa0] sm:$0xf]  ;;  %v5248_v59 = vld [vmem:[%s6598_s11 + $0x9c] sm:$0xe] }
  0x95   : > { %v4984_v41 = vcombine.low %v615_v55, %v625_v36  ;;  %v5278_v37 = vcombine.low %v2868_v26, %v2871_v51  ;;  %v2881_v47 = vrot.slane %v5184_v0, 5  ;;  %v2884_v60 = vrot.slane %v5185_v39, 5  ;;  %v6361_v21 = vld [vmem:[%s6598_s11 + $0xc] sm:$0xf]  ;;  %v7076_v23 = vld [vmem:[%s6598_s11 + $0x10] sm:$0xf] }
  0x96   : > { %5865 = vmatmul.mubr.msk.bf16.gmra.mrb[12].mxu0 %vm683_vm3, %v5277_v13  ;;  %v2875_v49 = vsel %vm6839_vm6, %v5261_v56, %v2874_v57  ;;  %v2876_v53 = vrot.slane %v2874_v57, 4  ;;  %v2888_v61 = vrot.slane %v5187_v45, 5  ;;  %v5003_v9 = vcombine.low %v6361_v21, %v7076_v23  ;;  %v6363_v27 = vld [vmem:[%s6598_s11 + $0x18] sm:$0xf]  ;;  %v7085_v29 = vld [vmem:[%s6598_s11 + $0x1c] sm:$0xf] }
  0x97   : > { %5711 = vmatmul.mubr.msk.bf16.gmra.mrb[28].mxu1 %vm683_vm3, %v4984_v41  ;;  %5868 = vmatprep.mubr.msk.bf16.mxu0 %vm683_vm3, %v5278_v37  ;;  %v2882_v1 = vsel %vm6839_vm6, %v5262_v44, %v2881_v47  ;;  %v2883_v6 = vrot.slane %v2881_v47, 4  ;;  %v5263_v46 = vrot.slane %v5247_v10, 9  ;;  %v2891_v54 = vrot.slane %v5188_v52, 5  ;;  %v5193_v51 = vld [vmem:[%s6598_s11 + $0xac] sm:$0xf]  ;;  %v7093_v39 = vld [vmem:[%s8389_s1 + $0x18] sm:$0xff]  }
  0x98   : > { %5716 = vmatprep.mubr.msk.bf16.mxu1 %vm683_vm3, %v5002_v32  ;;  %v2878_v20 = vsel %vm6839_vm6, %v2876_v53, %v2877_v43  ;;  %v2890_v26 = vrot.slane %v2888_v61, 4  ;;  %v2895_v3 = vrot.slane %v5190_v63, 5  ;;  %v5004_v32 = vcombine.low %v6363_v27, %v7085_v29  ;;  %v5196_v0 = vld [vmem:[%s6598_s11 + $0xb8] sm:$0xf]  ;;  %v6365_v57 = vld [vmem:[%s8389_s1 + $0x10] sm:$0xff]  }
  0x99   : > { %v5279_v55 = vcombine.low %v2875_v49, %v2878_v20  ;;  %v2885_v18 = vsel %vm6839_vm6, %v2883_v6, %v2884_v60  ;;  %v5264_v36 = vrot.slane %v5248_v59, 9  ;;  %v2898_v13 = vrot.slane %v5191_v11, 5  ;;  %v5194_v47 = vld [vmem:[%s6598_s11 + $0xb0] sm:$0x1]  ;;  %v5249_v60 = vld [vmem:[%s6598_s11 + $0xa8] sm:$0xe] }
  0x9a   : > { %v5280_v35 = vcombine.low %v2882_v1, %v2885_v18  ;;  %v2897_v56 = vrot.slane %v2895_v3, 4  ;;  %v2889_v41 = vsel %vm6839_vm6, %v5263_v46, %v2888_v61  ;;  %v2892_v37 = vsel %vm6839_vm6, %v2890_v26, %v2891_v54  ;;  %v5197_v10 = vld [vmem:[%s6598_s11 + $0xbc] sm:$0x1]  ;;  %v5250_v49 = vld [vmem:[%s6598_s11 + $0xb4] sm:$0xe] }
  0x9b   : > { %v2902_v45 = vrot.slane %v5193_v51, 5  ;;  %v2896_v43 = vsel %vm6839_vm6, %v5264_v36, %v2895_v3  ;;  %v2909_v52 = vrot.slane %v5196_v0, 5  ;;  %v6366_v53 = vld [vmem:[%s6598_s11 + $0x24] sm:$0xf]  ;;  %v7117_v61 = vld [vmem:[%s6598_s11 + $0x28] sm:$0xf]  ;;  %v5281_v1 = vcombine.low %v2889_v41, %v2892_v37 }
  0x9c   : > { %v2899_v44 = vsel %vm6839_vm6, %v2897_v56, %v2898_v13  ;;  %v5005_v63 = vcombine.low %v6366_v53, %v7117_v61  ;;  %v5199_v6 = vld [vmem:[%s6598_s11 + $0xc4] sm:$0xf]  ;;  %v5265_v59 = vrot.slane %v5249_v60, 9  ;;  %v6368_v20 = vld [vmem:[%s6598_s11 + $0x30] sm:$0xf]  ;;  %v2912_v26 = vrot.slane %v5197_v10, 5 }
  0x9d   : > { %v5282_v11 = vcombine.low %v2896_v43, %v2899_v44  ;;  %v2904_v21 = vrot.slane %v2902_v45, 4  ;;  %v7123_v46 = vld [vmem:[%s6598_s11 + $0x34] sm:$0xf]  ;;  %v2911_v18 = vrot.slane %v2909_v52, 4  ;;  %v5200_v13 = vld [vmem:[%s6598_s11 + $0xc8] sm:$0x1] }
  0x9e   : > { %5869 = vmatmul.mubr.msk.bf16.gmra.mrb[16].mxu0 %vm683_vm3, %v5279_v55  ;;  %v5006_v54 = vcombine.low %v6368_v20, %v7123_v46  ;;  %v5266_v55 = vrot.slane %v5250_v49, 9  ;;  %v2903_v3 = vsel %vm6839_vm6, %v5265_v59, %v2902_v45  ;;  %v5251_v51 = vld [vmem:[%s6598_s11 + $0xc0] sm:$0xe]  ;;  %v6370_v56 = vld [vmem:[%s6598_s11 + $0x3c] sm:$0xf]  ;;  %v2919_v44 = vrot.slane %v5200_v13, 5 }
  0x9f   : > { %5717 = vmatmul.mubr.msk.bf16.vlgmr.msra.gmra.mrb[0].mxu1 %vm683_vm3, %v5003_v9  ;;  %5872 = vmatprep.mubr.msk.bf16.mxu0 %vm683_vm3, %v5280_v35  ;;  %v2905_v9 = vrot.slane %v5194_v47, 5  ;;  %v2913_v36 = vsel %vm6839_vm6, %v2911_v18, %v2912_v26  ;;  %v7142_v0 = vld [vmem:[%s6598_s11 + $0x40] sm:$0xf]  ;;  %v5008_v47 = vcombine.low %v6752_v15, %v6755_v25  ;;  %v2289_v10 = vshll.u32 %v7046_v34, 16  ;;  %v6317_v53 = vld [vmem:[%s6598_s11 + $0x18] sm:$0xff]  }
  0xa0   : > { %5749 = vmatpush3.bf16.msra.mxu1 %v6365_v57  ;;  %5720 = vmatprep.mubr.msk.bf16.mxu1 %vm683_vm3, %v5004_v32  ;;  %v2916_v32 = vrot.slane %v5199_v6, 5  ;;  %v2910_v35 = vsel %vm6839_vm6, %v5266_v55, %v2909_v52  ;;  %v5007_v41 = vcombine.low %v6370_v56, %v7142_v0  ;;  %v5267_v57 = vrot.slane %v5251_v51, 9 }
  0xa1   : > { %5782 = vmatprep.subr.bf16.mxu1 %v7093_v39  ;;  %v2906_v27 = vsel %vm6839_vm6, %v2904_v21, %v2905_v9  ;;  %v5284_v45 = vcombine.low %v2910_v35, %v2913_v36  ;;  %v2293_v15 = vshrl.u32 %v7046_v34, 16  ;;  %v5009_v49 = vcombine.low %v6781_v8, %v6787_v19  ;;  %v1188_v8 = vld [vmem:[%s6598_s11] sm:$0xe]  ;;  %v1189_v19 = vld [vmem:[%s6598_s11 + $0xc] sm:$0xe] }
  0xa2   : > { %v5283_v37 = vcombine.low %v2903_v3, %v2906_v27  ;;  %v2918_v43 = vrot.slane %v2916_v32, 4  ;;  %v2917_v60 = vsel %vm6839_vm6, %v5267_v57, %v2916_v32  ;;  %v1248_v21 = vrot.slane %v7076_v23, 5  ;;  %v1190_v34 = vld [vmem:[%s6598_s11 + $0x18] sm:$0xe]  ;;  %v6320_v27 = vld [vmem:[%s6598_s11 + $0x24] sm:$0xff]   ;;  %v6322_v32 = vld [vmem:[%s6598_s11 + $0x30] sm:$0xff]  }
  0xa3   : > { %v2295_v6 = vrot.slane %v2293_v15, 4  ;;  %v2299_v9 = vshll.u32 %v7049_v22, 16  ;;  %v1241_v23 = vrot.slane %v7042_v31, 5  ;;  %v1255_v20 = vrot.slane %v7085_v29, 5  ;;  %v1192_v36 = vld [vmem:[%s6598_s11 + $0x30] sm:$0xe] }
  0xa4   : > { %v2920_v52 = vsel %vm6839_vm6, %v2918_v43, %v2919_v44  ;;  %v5011_v18 = vcombine.low %v6833_v48, %v6846_v7  ;;  %v1262_v26 = vrot.slane %v7117_v61, 5  ;;  %v1269_v3 = vrot.slane %v7123_v46, 5  ;;  %v6374_v48 = vld [vmem:[%s6598_s11 + $0x20] sm:$0x1]  ;;  %v6375_v57 = vld [vmem:[%s6598_s11 + $0x2c] sm:$0x1] }
  0xa5   : > { %v5285_v25 = vcombine.low %v2917_v60, %v2920_v52  ;;  %v5012_v22 = vcombine.low %v6865_v38, %v6872_v14  ;;  %v5013_v31 = vcombine.low %v6891_v12, %v6899_v24  ;;  %v5035_v29 = vrot.slane %v1188_v8, 9  ;;  %v7194_v46 = vld [vmem:[%s8389_s1 + $0x40] sm:$0xff]  }
  0xa6   : > { %5873 = vmatmul.mubr.msk.bf16.gmra.mrb[20].mxu0 %vm683_vm3, %v5281_v1  ;;  %v7162_v1 = vrot.slane %v2289_v10, 5  ;;  %v5036_v35 = vrot.slane %v1189_v19, 9  ;;  %v1250_v13 = vrot.slane %v1248_v21, 4  ;;  %v5037_v51 = vrot.slane %v1190_v34, 9  ;;  %v6376_v10 = vld [vmem:[%s6598_s11 + $0x38] sm:$0x1] }
  0xa7   : > { %5721 = vmatmul.mubr.msk.bf16.gmra.mrb[4].mxu1 %vm683_vm3, %v5005_v63  ;;  %5876 = vmatprep.mubr.msk.bf16.mxu0 %vm683_vm3, %v5282_v11  ;;  %v5010_v63 = vcombine.low %v6812_v5, %v6818_v17  ;;  %v6372_v11 = vld [vmem:[%s6598_s11 + $0x8] sm:$0x1]  ;;  %v6373_v5 = vld [vmem:[%s6598_s11 + $0x14] sm:$0x1]  ;;  %v1258_v7 = vrot.slane %v6374_v48, 5  ;;  %v5014_v38 = vcombine.low %v6923_v50, %v6928_v58  ;;  %v5015_v14 = vcombine.low %v6951_v40, %v6956_v42 }
  0xa8   : > { %5724 = vmatprep.mubr.msk.bf16.mxu1 %vm683_vm3, %v5006_v54  ;;  %8410 = vst [vmem:[#allocation5_spill] sm:$0xff] %v7162_v1  ;;  %v1244_v59 = vrot.slane %v6372_v11, 5  ;;  %v1251_v17 = vrot.slane %v6373_v5, 5  ;;  %v1191_v54 = vld [vmem:[%s6598_s11 + $0x24] sm:$0xe]  ;;  %v2296_v55 = vor.u32 %v2295_v6, %v7162_v1  ;;  %v1243_v56 = vrot.slane %v1241_v23, 4 }
  0xa9   : > { %v5038_v61 = vrot.slane %v1191_v54, 9  ;;  %v1265_v43 = vrot.slane %v6375_v57, 5  ;;  %v5039_v44 = vrot.slane %v1192_v36, 9  ;;  %v5016_v60 = vcombine.low %v6975_v33, %v6980_v30  ;;  %v1194_v6 = vld [vmem:[%s6598_s11 + $0x48] sm:$0xe]  ;;  %v6328_v58 = vld [vmem:[%s6598_s11 + $0x54] sm:$0xff]  }
  0xaa   : > { %v7207_v52 = vsel %vm6839_vm6, %v5035_v29, %v1241_v23  ;;  %v1272_v15 = vrot.slane %v6376_v10, 5  ;;  %v7228_v11 = vrot.slane %v2296_v55, 4  ;;  %v5370_v34 = vld [vmem:[%s6598_s11 + $0x18] sm:$0xf]  ;;  %v6326_v5 = vld [vmem:[%s6598_s11 + $0x48] sm:$0xff]  }
  0xab   : > { %v7243_v19 = vsel %vm6839_vm6, %v5038_v61, %v1262_v26  ;;  %v6377_v23 = vld [vmem:[%s6598_s11 + $0x44] sm:$0x1]  ;;  %v1195_v55 = vld [vmem:[%s6598_s11 + $0x54] sm:$0xe]  ;;  %v3637_v48 = vshll.u32 %v5370_v34, 16 }
  0xac   : > { %8412 = vst [vmem:[#allocation7_spill] sm:$0xff] %v7228_v11  ;;  %v5042_v10 = vrot.slane %v1195_v55, 9  ;;  %v5376_v55 = vld [vmem:[%s6598_s11 + $0x30] sm:$0xf]  ;;  %v5377_v50 = vld [vmem:[%s6598_s11 + $0x34] sm:$0xf] }
  0xad   : > { %v3639_v24 = vrot.slane %v3637_v48, 5 }
  0xae   : > { %5877 = vmatmul.mubr.msk.bf16.gmra.mrb[24].mxu0 %vm683_vm3, %v5283_v37  ;;  %v1193_v37 = vld [vmem:[%s6598_s11 + $0x3c] sm:$0xe] }
  0xaf   : > { %5725 = vmatmul.mubr.msk.bf16.gmra.mrb[8].mxu1 %vm683_vm3, %v5007_v41  ;;  %5880 = vmatprep.mubr.msk.bf16.mxu0 %vm683_vm3, %v5284_v45  ;;  %v1257_v41 = vrot.slane %v1255_v20, 4  ;;  %v1264_v45 = vrot.slane %v1262_v26, 4 }
  0xb0   : > { %5728 = vmatprep.mubr.msk.bf16.mxu1 %vm683_vm3, %v5008_v47  ;;  %v1271_v47 = vrot.slane %v1269_v3, 4 }
  0xb1   : > { %v7239_v8 = vsel %vm6839_vm6, %v1257_v41, %v1258_v7  ;;  %v7258_v26 = vsel %vm6839_vm6, %v1264_v45, %v1265_v43  ;;  %v6379_v45 = vld [vmem:[%s6598_s11 + $0x50] sm:$0x1]  ;;  %v3691_v41 = vshll.u32 %v5377_v50, 16 }
  0xb2   : > { %v1286_v57 = vrot.slane %v6379_v45, 5  ;;  %v8420_v11 = vcombine.low %v7243_v19, %v7258_v26 }
  0xb6   : > { %5881 = vmatmul.mubr.msk.bf16.gmra.mrb[28].mxu0 %vm683_vm3, %v5285_v25  ;;  %v1276_v25 = vrot.slane %v7142_v0, 5  ;;  %v7225_v0 = vsel %vm6839_vm6, %v5037_v51, %v1255_v20  ;;  %v1279_v20 = vrot.slane %v6377_v23, 5  ;;  %v3634_v51 = vshrl.u32 %v5370_v34, 16  ;;  %v7302_v34 = vld [vmem:[%s6598_s11 + $0x5c] sm:$0x1] }
  0xb7   : > { %5729 = vmatmul.mubr.msk.bf16.gmra.mrb[12].mxu1 %vm683_vm3, %v5009_v49  ;;  %5886 = vmatprep.mubr.msk.bf16.mxu0 %vm683_vm3, %v6317_v53  ;;  %v7211_v49 = vrot.slane %v2299_v9, 5  ;;  %v7217_v53 = vsel %vm6839_vm6, %v5036_v35, %v1248_v21  ;;  %v7235_v21 = vsel %vm6839_vm6, %v1243_v56, %v1244_v59  ;;  %v5040_v9 = vrot.slane %v1193_v37, 9  ;;  %v6378_v59 = vld [vmem:[%s6598_s11 + $0x4c] sm:$0xf] }
  0xb8   : > { %5732 = vmatprep.mubr.msk.bf16.mxu1 %vm683_vm3, %v5010_v63  ;;  %v7221_v63 = vsel %vm6839_vm6, %v1250_v13, %v1251_v17  ;;  %v7249_v17 = vsel %vm6839_vm6, %v5039_v44, %v1269_v3  ;;  %v1283_v54 = vrot.slane %v6378_v59, 5  ;;  %v1278_v3 = vrot.slane %v1276_v25, 4  ;;  %v7273_v13 = vld [vmem:[%s6598_s11 + $0x60] sm:$0xe] }
  0xb9   : > { %8411 = vst [vmem:[#allocation6_spill] sm:$0xff] %v7211_v49  ;;  %v7283_v43 = vsel %vm6839_vm6, %v5040_v9, %v1276_v25  ;;  %v6380_v25 = vld [vmem:[%s6598_s11 + $0x58] sm:$0xf]  ;;  %v1293_v9 = vrot.slane %v7302_v34, 5  ;;  %v5043_v23 = vrot.slane %v7273_v13, 9  ;;  %v3636_v12 = vrot.slane %v3634_v51, 4 }
  0xba   : > { %v1285_v37 = vrot.slane %v1283_v54, 4  ;;  %v7287_v44 = vsel %vm6839_vm6, %v1278_v3, %v1279_v20  ;;  %v6382_v20 = vld [vmem:[%s6598_s11 + $0x64] sm:$0xf]  ;;  %v6383_v34 = vld [vmem:[%s6598_s11 + $0x70] sm:$0xf]  ;;  %v3695_v56 = vshrl.u32 %v5377_v50, 16 }
  0xbb   : > { %v1297_v59 = vrot.slane %v6382_v20, 5  ;;  %v1304_v20 = vrot.slane %v6383_v34, 5  ;;  %v5375_v34 = vld [vmem:[%s6598_s11 + $0x2c] sm:$0x1] }
  0xbc   : > { %v7319_v3 = vsel %vm6839_vm6, %v1285_v37, %v1286_v57  ;;  %v3682_v37 = vshrl.u32 %v5376_v55, 16  ;;  %v3685_v57 = vshll.u32 %v5376_v55, 16 }
  0xbd   : > { %v1299_v36 = vrot.slane %v1297_v59, 4 }
  0xbe   : > { %5887 = vmatmul.mubr.msk.bf16.vlgmr.msra.gmra.mrb[0].mxu0 %vm683_vm3, %v6320_v27  ;;  %v7262_v27 = vsel %vm6839_vm6, %v1271_v47, %v1272_v15  ;;  %v5372_v15 = vld [vmem:[%s6598_s11 + $0x20] sm:$0x1]  ;;  %v3687_v50 = vrot.slane %v3685_v57, 5  ;;  %v6334_v57 = vld [vmem:[%s6598_s11 + $0x78] sm:$0xff]  }
  0xbf   : > { %5733 = vmatmul.mubr.msk.bf16.gmra.mrb[16].mxu1 %vm683_vm3, %v5011_v18  ;;  %5919 = vmatpush3.bf16.msra.mxu0 %v6904_v16  ;;  %v6324_v16 = vld [vmem:[%s6598_s11 + $0x3c] sm:$0xff]   ;;  %v3653_v48 = vshll.u32 %v5372_v15, 16 }
  0xc0   : > { %5736 = vmatprep.mubr.msk.bf16.mxu1 %vm683_vm3, %v5012_v22  ;;  %5890 = vmatprep.mubr.msk.bf16.mxu0 %vm683_vm3, %v6322_v32  ;;  %v5371_v18 = vld [vmem:[%s6598_s11 + $0x1c] sm:$0xf]  ;;  %v5041_v22 = vrot.slane %v1194_v6, 9  ;;  %v5373_v6 = vld [vmem:[%s6598_s11 + $0x24] sm:$0xf] }
  0xc1   : > { %5952 = vmatprep.subr.bf16.mxu0 %v7194_v46  ;;  %v3643_v7 = vshll.u32 %v5371_v18, 16  ;;  %v3647_v61 = vshrl.u32 %v5371_v18, 16  ;;  %v3661_v13 = vshll.u32 %v5373_v6, 16  ;;  %v3640_v18 = vor.u32 %v3639_v24, %v3636_v12 }
  0xc2   : > { %v7291_v47 = vsel %vm6839_vm6, %v5041_v22, %v1283_v54  ;;  %v5374_v54 = vld [vmem:[%s6598_s11 + $0x28] sm:$0xf]  ;;  %v3658_v22 = vshrl.u32 %v5373_v6, 16  ;;  %v1306_v24 = vrot.slane %v1304_v20, 4 }
  0xc3   : > { %v3663_v29 = vrot.slane %v3661_v13, 5  ;;  %v3684_v13 = vrot.slane %v3682_v37, 4  ;;  %v3641_v40 = vrot.slane %v3640_v18, 4 }
  0xc4   : > { %v3660_v15 = vrot.slane %v3658_v22, 4  ;;  %v5378_v22 = vld [vmem:[%s6598_s11 + $0x38] sm:$0x1] }
  0xc5   : > { %v3701_v37 = vshll.u32 %v5378_v22, 16 }
  0xc6   : > { %5891 = vmatmul.mubr.msk.bf16.gmra.mrb[4].mxu0 %vm683_vm3, %v6324_v16  ;;  %v1290_v16 = vrot.slane %v6380_v25, 5  ;;  %v1197_v25 = vld [vmem:[%s6598_s11 + $0x6c] sm:$0xe] }
  0xc7   : > { %5737 = vmatmul.mubr.msk.bf16.gmra.mrb[20].mxu1 %vm683_vm3, %v5013_v31  ;;  %5894 = vmatprep.mubr.msk.bf16.mxu0 %vm683_vm3, %v6326_v5  ;;  %v7312_v31 = vrot.slane %v3643_v7, 5  ;;  %v3649_v5 = vrot.slane %v3647_v61, 4  ;;  %v3667_v7 = vshll.u32 %v5374_v54, 16  ;;  %v3671_v61 = vshrl.u32 %v5374_v54, 16 }
  0xc8   : > { %5740 = vmatprep.mubr.msk.bf16.mxu1 %vm683_vm3, %v5014_v38  ;;  %v6330_v38 = vld [vmem:[%s6598_s11 + $0x60] sm:$0xff]   ;;  %v7326_v51 = vsel %vm6839_vm6, %v5042_v10, %v1290_v16  ;;  %v1292_v45 = vrot.slane %v1290_v16, 4  ;;  %v6384_v10 = vld [vmem:[%s6598_s11 + $0x68] sm:$0x1]  ;;  %v7333_v16 = vrot.slane %v3653_v48, 5  ;;  %v5044_v54 = vrot.slane %v1197_v25, 9 }
  0xc9   : > { %v3650_v6 = vor.u32 %v3649_v5, %v7312_v31  ;;  %v1300_v35 = vrot.slane %v6384_v10, 5  ;;  %v7336_v32 = vrot.slane %v3667_v7, 5  ;;  %v3673_v12 = vrot.slane %v3671_v61, 4  ;;  %v6385_v5 = vld [vmem:[%s6598_s11 + $0x74] sm:$0x1]  ;;  %v6332_v25 = vld [vmem:[%s6598_s11 + $0x6c] sm:$0xff]  }
  0xca   : > { %v1307_v55 = vrot.slane %v6385_v5, 5  ;;  %v7355_v48 = vsel %vm6839_vm6, %v5043_v23, %v1297_v59  ;;  %v3664_v7 = vor.u32 %v3663_v29, %v3660_v15  ;;  %v3677_v61 = vshll.u32 %v5375_v34, 16  ;;  %v6387_v10 = vld [vmem:[%s6598_s11 + $0x88] sm:$0xf] }
  0xcb   : > { %v3651_v42 = vrot.slane %v3650_v6, 4  ;;  %v7360_v33 = vsel %vm6839_vm6, %v1292_v45, %v1293_v9  ;;  %v7368_v23 = vsel %vm6839_vm6, %v1299_v36, %v1300_v35  ;;  %v7372_v29 = vsel %vm6839_vm6, %v5044_v54, %v1304_v20  ;;  %v1199_v45 = vld [vmem:[%s6598_s11 + $0x84] sm:$0xe]  ;;  %v5379_v20 = vld [vmem:[%s6598_s11 + $0x3c] sm:$0xf] }
  0xcc   : > { %v7376_v9 = vsel %vm6839_vm6, %v1306_v24, %v1307_v55  ;;  %v3688_v59 = vor.u32 %v3687_v50, %v3684_v13  ;;  %v3646_v6 = vsel %vm6617_vm2, %v3641_v40, %v7312_v31  ;;  %v1318_v15 = vrot.slane %v6387_v10, 5  ;;  %v6388_v24 = vld [vmem:[%s6598_s11 + $0x80] sm:$0x1] }
  0xcd   : > { %v3656_v35 = vsel %vm6617_vm2, %v3651_v42, %v7333_v16  ;;  %v3665_v54 = vrot.slane %v3664_v7, 4  ;;  %v3679_v34 = vrot.slane %v3677_v61, 5  ;;  %v1314_v5 = vrot.slane %v6388_v24, 5  ;;  %v7390_v55 = vld [vmem:[%s6598_s11 + $0x40] sm:$0xf] }
  0xce   : > { %5895 = vmatmul.mubr.msk.bf16.gmra.mrb[8].mxu0 %vm683_vm3, %v6328_v58  ;;  %v3697_v58 = vrot.slane %v3695_v56, 4  ;;  %v1198_v56 = vld [vmem:[%s6598_s11 + $0x78] sm:$0xe]  ;;  %8413 = vst [vmem:[#allocation8_spill] sm:$0xff] %v7390_v55  ;;  %v3703_v13 = vrot.slane %v3701_v37, 5  ;;  %v5046_v16 = vrot.slane %v1199_v45, 9  ;;  %v8414_v50 = vcombine.low %v6990_v62, %v7002_v4 }
  0xcf   : > { %5741 = vmatmul.mubr.msk.bf16.gmra.mrb[24].mxu1 %vm683_vm3, %v5015_v14  ;;  %5898 = vmatprep.mubr.msk.bf16.mxu0 %vm683_vm3, %v6330_v38  ;;  %v7349_v14 = vrot.slane %v3691_v41, 5  ;;  %v6386_v41 = vld [vmem:[%s6598_s11 + $0x7c] sm:$0xf]  ;;  %v3689_v40 = vrot.slane %v3688_v59, 4  ;;  %v6389_v42 = vld [vmem:[%s6598_s11 + $0x8c] sm:$0x1]  ;;  %v3670_v45 = vsel %vm6617_vm2, %v3665_v54, %v7336_v32 }
  0xd0   : > { %5744 = vmatprep.mubr.msk.bf16.mxu1 %vm683_vm3, %v5016_v60  ;;  %v3674_v60 = vor.u32 %v3673_v12, %v7336_v32  ;;  %v1311_v18 = vrot.slane %v6386_v41, 5  ;;  %v5045_v12 = vrot.slane %v1198_v56, 9  ;;  %v3706_v7 = vshrl.u32 %v5379_v20, 16  ;;  %v6335_v41 = vld [vmem:[%s6598_s11 + $0x84] sm:$0xff]   ;;  %v6336_v59 = vld [vmem:[%s6598_s11 + $0x90] sm:$0xff]  }
  0xd1   : > { %v3698_v36 = vor.u32 %v3697_v58, %v7349_v14  ;;  %v1321_v58 = vrot.slane %v6389_v42, 5  ;;  %v3709_v61 = vshll.u32 %v5379_v20, 16  ;;  %v1320_v56 = vrot.slane %v1318_v15, 4  ;;  %v7430_v20 = vld [vmem:[%s6598_s11 + $0x4c] sm:$0xf] }
  0xd2   : > { %v3675_v31 = vrot.slane %v3674_v60, 4  ;;  %v1313_v22 = vrot.slane %v1311_v18, 4  ;;  %v3715_v62 = vshll.u32 %v7390_v55, 16  ;;  %v3719_v4 = vshrl.u32 %v7390_v55, 16  ;;  %v7508_v37 = vld [vmem:[%s6598_s11 + $0x5c] sm:$0x1] }
  0xd3   : > { %v3699_v60 = vrot.slane %v3698_v36, 4  ;;  %v7422_v10 = vsel %vm6839_vm6, %v5045_v12, %v1311_v18  ;;  %v3694_v24 = vsel %vm6617_vm2, %v3689_v40, %v7349_v14  ;;  %v7437_v32 = vsel %vm6839_vm6, %v5046_v16, %v1318_v15  ;;  %v7441_v18 = vld [vmem:[%s6598_s11 + $0x58] sm:$0xf]  ;;  %v7455_v40 = vld [vmem:[%s6598_s11 + $0x90] sm:$0xe] }
  0xd4   : > { %v3680_v36 = vsel %vm6617_vm2, %v3675_v31, %v3679_v34  ;;  %v3708_v54 = vrot.slane %v3706_v7, 4  ;;  %v3711_v34 = vrot.slane %v3709_v61, 5  ;;  %v5385_v31 = vld [vmem:[%s6598_s11 + $0x54] sm:$0xf]  ;;  %v3721_v14 = vrot.slane %v3719_v4, 4 }
  0xd5   : > { %v3704_v12 = vsel %vm6617_vm2, %v3699_v60, %v3703_v13  ;;  %v3739_v42 = vshll.u32 %v7430_v20, 16  ;;  %v3743_v7 = vshrl.u32 %v7430_v20, 16  ;;  %v3754_v13 = vshrl.u32 %v5385_v31, 16  ;;  %v1201_v38 = vld [vmem:[%s6598_s11 + $0x9c] sm:$0xe] }
  0xd6   : > { %5899 = vmatmul.mubr.msk.bf16.gmra.mrb[12].mxu0 %vm683_vm3, %v6332_v25  ;;  %v8415_v25 = vcombine.low %v7207_v52, %v7235_v21  ;;  %v7410_v52 = vcombine.low %v3646_v6, %v3656_v35  ;;  %v7426_v6 = vsel %vm6839_vm6, %v1313_v22, %v1314_v5  ;;  %v5382_v35 = vld [vmem:[%s6598_s11 + $0x48] sm:$0xf]  ;;  %v7447_v5 = vsel %vm6839_vm6, %v1320_v56, %v1321_v58  ;;  %v7450_v22 = vld [vmem:[%s6598_s11 + $0x44] sm:$0x1] }
  0xd7   : > { %5745 = vmatmul.mubr.msk.bf16.gmra.mrb[28].mxu1 %vm683_vm3, %v8414_v50  ;;  %5902 = vmatprep.mubr.msk.bf16.mxu0 %vm683_vm3, %v6334_v57  ;;  %8416 = vst [vmem:[#allocation9_spill] sm:$0xff] %v7450_v22  ;;  %v7452_v50 = vrot.slane %v3715_v62, 5  ;;  %v3730_v15 = vshrl.u32 %v5382_v35, 16  ;;  %v3733_v16 = vshll.u32 %v5382_v35, 16  ;;  %v3757_v61 = vshll.u32 %v5385_v31, 16 }
  0xd8   : > { %5750 = vmatprep.mubr.msk.bf16.mxu1 %vm683_vm3, %v8415_v25  ;;  %v3763_v58 = vshll.u32 %v7441_v18, 16  ;;  %v3767_v25 = vshrl.u32 %v7441_v18, 16  ;;  %v8417_v60 = vcombine.low %v7217_v53, %v7221_v63  ;;  %v7467_v56 = vcombine.low %v3670_v45, %v3680_v36  ;;  %v7484_v35 = vld [vmem:[%s6598_s11 + $0x50] sm:$0x1]  ;;  %v6392_v62 = vld [vmem:[%s6598_s11 + $0x98] sm:$0x1] }
  0xd9   : > { %v7471_v4 = vcombine.low %v3694_v24, %v3704_v12  ;;  %v8418_v53 = vcombine.low %v7225_v0, %v7239_v8  ;;  %v3722_v45 = vor.u32 %v3721_v14, %v7452_v50  ;;  %v5388_v24 = vld [vmem:[%s6598_s11 + $0x60] sm:$0xf]  ;;  %v3732_v31 = vrot.slane %v3730_v15, 4  ;;  %v7490_v8 = vld [vmem:[%s6598_s11 + $0x64] sm:$0xf]  ;;  %v6338_v14 = vld [vmem:[%s6598_s11 + $0xa8] sm:$0xff]  }
  0xda   : > { %v7487_v12 = vrot.slane %v3739_v42, 5  ;;  %v3745_v0 = vrot.slane %v3743_v7, 4  ;;  %v3759_v15 = vrot.slane %v3757_v61, 5  ;;  %v6391_v7 = vld [vmem:[%s6598_s11 + $0x94] sm:$0xf]  ;;  %v1328_v21 = vrot.slane %v6392_v62, 5 }
  0xdb   : > { %v1325_v63 = vrot.slane %v6391_v7, 5  ;;  %v3749_v57 = vshll.u32 %v7484_v35, 16  ;;  %v3778_v36 = vshrl.u32 %v5388_v24, 16  ;;  %v3791_v61 = vshrl.u32 %v7490_v8, 16  ;;  %v6393_v7 = vld [vmem:[%s6598_s11 + $0xa0] sm:$0xf] }
  0xdc   : > { %v1332_v55 = vrot.slane %v6393_v7, 5  ;;  %v3723_v62 = vrot.slane %v3722_v45, 4  ;;  %v1339_v45 = vrot.slane %v6980_v30, 5  ;;  %v7535_v7 = vld [vmem:[%s6598_s11 + $0x68] sm:$0x1]  ;;  %v6339_v30 = vld [vmem:[%s6598_s11 + $0xb4] sm:$0xff]  }
  0xdd   : > { %v3780_v19 = vrot.slane %v3778_v36, 4  ;;  %8422 = vst [vmem:[#allocation11_spill] sm:$0xff] %v7535_v7  ;;  %v6340_v36 = vld [vmem:[%s6598_s11 + $0xc0] sm:$0xff]  }
  0xde   : > { %5903 = vmatmul.mubr.msk.bf16.gmra.mrb[16].mxu0 %vm683_vm3, %v6335_v41  ;;  %v3725_v41 = vshll.u32 %v7450_v22, 16  ;;  %v3781_v22 = vshll.u32 %v5388_v24, 16  ;;  %v3773_v24 = vshll.u32 %v7508_v37, 16 }
  0xdf   : > { %5751 = vmatmul.mubr.msk.bf16.vlgmr.msra.gmra.mrb[0].mxu1 %vm683_vm3, %v8417_v60  ;;  %5906 = vmatprep.mubr.msk.bf16.mxu0 %vm683_vm3, %v6336_v59  ;;  %v3712_v59 = vor.u32 %v3711_v34, %v3708_v54  ;;  %v7495_v54 = vld [vmem:[%s8389_s1 + $0x20] sm:$0xff]   ;;  %v3756_v60 = vrot.slane %v3754_v13, 4  ;;  %v3787_v13 = vshll.u32 %v7490_v8, 16 }
  0xe0   : > { %5783 = vmatpush3.bf16.msra.mxu1 %v7093_v39  ;;  %5754 = vmatprep.mubr.msk.bf16.mxu1 %vm683_vm3, %v8418_v53  ;;  %v3735_v39 = vrot.slane %v3733_v16, 5  ;;  %8419 = vst [vmem:[#allocation10_spill] sm:$0xff] %v7495_v54  ;;  %v6337_v34 = vld [vmem:[%s6598_s11 + $0x9c] sm:$0xff]   ;;  %v7500_v53 = vrot.slane %v3763_v58, 5  ;;  %v3769_v16 = vrot.slane %v3767_v25, 4  ;;  %v7502_v42 = vrot.slane %v3725_v41, 5 }
  0xe1   : > { %5986 = vmatprep.subr.bf16.mxu1 %v7495_v54  ;;  %v7513_v58 = vrot.slane %v3712_v59, 4  ;;  %v3746_v41 = vor.u32 %v3745_v0, %v7487_v12  ;;  %v3760_v54 = vor.u32 %v3759_v15, %v3756_v60  ;;  %v1327_v59 = vrot.slane %v1325_v63, 4  ;;  %v1202_v0 = vld [vmem:[%s6598_s11 + $0xa8] sm:$0xe] }
  0xe2   : > { %v3736_v25 = vor.u32 %v3735_v39, %v3732_v31  ;;  %v3770_v1 = vor.u32 %v3769_v16, %v7500_v53  ;;  %v3751_v31 = vrot.slane %v3749_v57, 5  ;;  %v5048_v39 = vrot.slane %v1201_v38, 9  ;;  %v6394_v57 = vld [vmem:[%s6598_s11 + $0xa4] sm:$0x1] }
  0xe3   : > { %v3783_v26 = vrot.slane %v3781_v22, 5  ;;  %v7531_v60 = vrot.slane %v3787_v13, 5  ;;  %v3747_v15 = vrot.slane %v3746_v41, 4  ;;  %v1334_v16 = vrot.slane %v1332_v55, 4  ;;  %v6395_v41 = vld [vmem:[%s6598_s11 + $0xb0] sm:$0x1] }
  0xe4   : > { %v1335_v38 = vrot.slane %v6394_v57, 5  ;;  %v5049_v49 = vrot.slane %v1202_v0, 9  ;;  %v3718_v22 = vsel %vm6617_vm2, %v7513_v58, %v7452_v50  ;;  %v8423_v13 = vrot.slane %v7455_v40, 9  ;;  %v1203_v50 = vld [vmem:[%s6598_s11 + $0xb4] sm:$0xe] }
  0xe5   : > { %v1342_v57 = vrot.slane %v6395_v41, 5  ;;  %v3797_v0 = vshll.u32 %v7535_v7, 16  ;;  %v5391_v58 = vld [vmem:[%s6598_s11 + $0x6c] sm:$0xf]  ;;  %v7559_v40 = vsel %vm6839_vm6, %v1327_v59, %v1328_v21  ;;  %v8425_v59 = vcombine.low %v7283_v43, %v7287_v44 }
  0xe6   : > { %5907 = vmatmul.mubr.msk.bf16.gmra.mrb[20].mxu0 %vm683_vm3, %v6337_v34  ;;  %v8421_v34 = vcombine.low %v7249_v17, %v7262_v27  ;;  %v3761_v17 = vrot.slane %v3760_v54, 4  ;;  %v3771_v27 = vrot.slane %v3770_v1, 4  ;;  %v3728_v1 = vsel %vm6617_vm2, %v3723_v62, %v7502_v42 }
  0xe7   : > { %5755 = vmatmul.mubr.msk.bf16.gmra.mrb[4].mxu1 %vm683_vm3, %v8420_v11  ;;  %5910 = vmatprep.mubr.msk.bf16.mxu0 %vm683_vm3, %v6338_v14  ;;  %v3793_v11 = vrot.slane %v3791_v61, 4  ;;  %v3737_v14 = vrot.slane %v3736_v25, 4  ;;  %v7547_v61 = vsel %vm6839_vm6, %v8423_v13, %v1325_v63  ;;  %v1341_v25 = vrot.slane %v1339_v45, 4 }
  0xe8   : > { %5758 = vmatprep.mubr.msk.bf16.mxu1 %vm683_vm3, %v8421_v34  ;;  %v3775_v34 = vrot.slane %v3773_v24, 5  ;;  %v3784_v54 = vor.u32 %v3783_v26, %v3780_v19  ;;  %v7566_v42 = vsel %vm6839_vm6, %v5048_v39, %v1332_v55  ;;  %v7570_v62 = vsel %vm6839_vm6, %v1334_v16, %v1335_v38  ;;  %v6396_v39 = vld [vmem:[%s6598_s11 + $0xb8] sm:$0xf] }
  0xe9   : > { %v3794_v24 = vor.u32 %v3793_v11, %v7531_v60  ;;  %v3742_v63 = vsel %vm6617_vm2, %v3737_v14, %v7487_v12  ;;  %v3752_v19 = vsel %vm6617_vm2, %v3747_v15, %v3751_v31  ;;  %v3766_v21 = vsel %vm6617_vm2, %v3761_v17, %v7500_v53  ;;  %v7619_v17 = vld [vmem:[%s6598_s11 + $0x7c] sm:$0xf] }
  0xea   : > { %v3776_v12 = vsel %vm6617_vm2, %v3771_v27, %v3775_v34  ;;  %v7582_v55 = vsel %vm6839_vm6, %v5049_v49, %v1339_v45  ;;  %v7591_v31 = vsel %vm6839_vm6, %v1341_v25, %v1342_v57  ;;  %v5050_v53 = vrot.slane %v1203_v50, 9  ;;  %v7595_v49 = vld [vmem:[%s6598_s11 + $0x70] sm:$0xf]  ;;  %8429 = vst [vmem:[#allocation15_spill] sm:$0xff] %v7619_v17  ;;  %v5397_v27 = vld [vmem:[%s6598_s11 + $0x84] sm:$0xf] }
  0xeb   : > { %8424 = vst [vmem:[#allocation12_spill] sm:$0xff] %v7582_v55  ;;  %8426 = vst [vmem:[#allocation13_spill] sm:$0xff] %v7591_v31  ;;  %v1346_v26 = vrot.slane %v6396_v39, 5  ;;  %v3802_v45 = vshrl.u32 %v5391_v58, 16  ;;  %v8428_v43 = vcombine.low %v7291_v47, %v7319_v3  ;;  %v7601_v44 = vcombine.low %v3718_v22, %v3728_v1  ;;  %v5394_v3 = vld [vmem:[%s6598_s11 + $0x78] sm:$0xf] }
  0xec   : > { %8427 = vst [vmem:[#allocation14_spill] sm:$0xff] %v7595_v49  ;;  %v7603_v11 = vrot.slane %v3784_v54, 4  ;;  %v7605_v14 = vrot.slane %v3794_v24, 4  ;;  %v7607_v15 = vrot.slane %v3797_v0, 5  ;;  %v7611_v38 = vcombine.low %v3742_v63, %v3752_v19  ;;  %v6341_v34 = vld [vmem:[%s6598_s11 + $0xcc] sm:$0xff]  }
  0xed   : > { %v7615_v47 = vcombine.low %v3766_v21, %v3776_v12  ;;  %v7626_v22 = vld [vmem:[%s6598_s11 + $0xbc] sm:$0x1]  ;;  %v3805_v25 = vshll.u32 %v5391_v58, 16  ;;  %v3811_v41 = vshll.u32 %v7595_v49, 16  ;;  %v7631_v57 = vld [vmem:[%s6598_s11 + $0x88] sm:$0xf]  ;;  %v7635_v1 = vsel %vm6839_vm6, %v5050_v53, %v1346_v26 }
  0xee   : > { %5911 = vmatmul.mubr.msk.bf16.gmra.mrb[24].mxu0 %vm683_vm3, %v6339_v30  ;;  %8430 = vst [vmem:[#allocation16_spill] sm:$0xff] %v7631_v57  ;;  %v7637_v54 = vrot.slane %v1346_v26, 4  ;;  %v7639_v24 = vrot.slane %v3802_v45, 4  ;;  %v3815_v0 = vshrl.u32 %v7595_v49, 16  ;;  %v5400_v50 = vld [vmem:[%s6598_s11 + $0x90] sm:$0xf]  ;;  %v8433_v58 = vcombine.low %v7326_v51, %v7360_v33 }
  0xef   : > { %5759 = vmatmul.mubr.msk.bf16.gmra.mrb[8].mxu1 %vm683_vm3, %v8425_v59  ;;  %5914 = vmatprep.mubr.msk.bf16.mxu0 %vm683_vm3, %v6340_v36  ;;  %v3826_v19 = vshrl.u32 %v5394_v3, 16  ;;  %v3829_v21 = vshll.u32 %v5394_v3, 16  ;;  %v7652_v12 = vld [vmem:[%s6598_s11 + $0x94] sm:$0xf]  ;;  %v3835_v53 = vshll.u32 %v7619_v17, 16  ;;  %v3839_v39 = vshrl.u32 %v7619_v17, 16 }
  0xf0   : > { %5762 = vmatprep.mubr.msk.bf16.mxu1 %vm683_vm3, %v8428_v43  ;;  %8431 = vst [vmem:[#allocation17_spill] sm:$0xff] %v7652_v12  ;;  %v7655_v59 = vld [vmem:[%s6598_s11 + $0x74] sm:$0x1]  ;;  %v3850_v26 = vshrl.u32 %v5397_v27, 16  ;;  %v3853_v45 = vshll.u32 %v5397_v27, 16  ;;  %v3859_v43 = vshll.u32 %v7631_v57, 16 }
  0xf1   : > { %8432 = vst [vmem:[#allocation18_spill] sm:$0xff] %v7655_v59  ;;  %v3863_v36 = vshrl.u32 %v7631_v57, 16  ;;  %v3874_v30 = vshrl.u32 %v5400_v50, 16  ;;  %v3877_v3 = vshll.u32 %v5400_v50, 16  ;;  %v3807_v63 = vrot.slane %v3805_v25, 5 }
  0xf2   : > { %v7668_v27 = vrot.slane %v3811_v41, 5  ;;  %v3883_v16 = vshll.u32 %v7652_v12, 16  ;;  %v3887_v13 = vshrl.u32 %v7652_v12, 16  ;;  %v8434_v50 = vcombine.low %v7355_v48, %v7368_v23  ;;  %v5403_v41 = vld [vmem:[%s6598_s11 + $0x9c] sm:$0xf] }
  0xf3   : > { %v3817_v51 = vrot.slane %v3815_v0, 4  ;;  %v3821_v33 = vshll.u32 %v7655_v59, 16  ;;  %v3831_v25 = vrot.slane %v3829_v21, 5  ;;  %v3841_v57 = vrot.slane %v3839_v39, 4  ;;  %v7684_v17 = vld [vmem:[%s6598_s11 + $0x8c] sm:$0x1] }
  0xf4   : > { %v3852_v49 = vrot.slane %v3850_v26, 4  ;;  %v3855_v12 = vrot.slane %v3853_v45, 5  ;;  %v7686_v31 = vrot.slane %v3859_v43, 5  ;;  %v3865_v48 = vrot.slane %v3863_v36, 4  ;;  %v7692_v0 = vld [vmem:[%s6598_s11 + $0x98] sm:$0x1] }
  0xf5   : > { %v3876_v23 = vrot.slane %v3874_v30, 4  ;;  %v3879_v55 = vrot.slane %v3877_v3, 5  ;;  %v7694_v59 = vrot.slane %v3883_v16, 5  ;;  %v3898_v21 = vshrl.u32 %v5403_v41, 16 }
  0xf6   : > { %5915 = vmatmul.mubr.msk.bf16.gmra.mrb[28].mxu0 %vm683_vm3, %v6341_v34  ;;  %v7671_v34 = vld [vmem:[%s6598_s11 + $0x80] sm:$0x1]  ;;  %v3808_v39 = vor.u32 %v3807_v63, %v7639_v24  ;;  %v3818_v7 = vor.u32 %v3817_v51, %v7668_v27  ;;  %v3856_v30 = vor.u32 %v3855_v12, %v3852_v49  ;;  %v3866_v16 = vor.u32 %v3865_v48, %v7686_v31 }
  0xf7   : > { %5763 = vmatmul.mubr.msk.bf16.gmra.mrb[12].mxu1 %vm683_vm3, %v8433_v58  ;;  %5920 = vmatprep.mubr.msk.bf16.mxu0 %vm683_vm3, %v7410_v52  ;;  %v3828_v52 = vrot.slane %v3826_v19, 4  ;;  %v7681_v58 = vrot.slane %v3835_v53, 5  ;;  %v3889_v19 = vrot.slane %v3887_v13, 4  ;;  %v3901_v53 = vshll.u32 %v5403_v41, 16 }
  0xf8   : > { %5766 = vmatprep.mubr.msk.bf16.mxu1 %vm683_vm3, %v8434_v50  ;;  %v7689_v50 = vld [vmem:[%s6598_s11 + $0xa0] sm:$0xf]  ;;  %v3845_v45 = vshll.u32 %v7671_v34, 16  ;;  %v3869_v13 = vshll.u32 %v7684_v17, 16  ;;  %v3880_v24 = vor.u32 %v3879_v55, %v3876_v23  ;;  %v3893_v63 = vshll.u32 %v7692_v0, 16 }
  0xf9   : > { %v3832_v26 = vor.u32 %v3831_v25, %v3828_v52  ;;  %v3842_v36 = vor.u32 %v3841_v57, %v7681_v58  ;;  %v3907_v43 = vshll.u32 %v7689_v50, 16  ;;  %v3911_v3 = vshrl.u32 %v7689_v50, 16 }
  0xfa   : > { %v8435_v51 = vcombine.low %v7372_v29, %v7376_v9  ;;  %v3823_v49 = vrot.slane %v3821_v33, 5  ;;  %v3890_v57 = vor.u32 %v3889_v19, %v7694_v59  ;;  %v3900_v12 = vrot.slane %v3898_v21, 4 }
  0xfb   : > { %v8436_v52 = vcombine.low %v7422_v10, %v7426_v6  ;;  %v3809_v55 = vrot.slane %v3808_v39, 4  ;;  %v3819_v29 = vrot.slane %v3818_v7, 4  ;;  %v3833_v9 = vrot.slane %v3832_v26, 4 }
  0xfc   : > { %v3847_v25 = vrot.slane %v3845_v45, 5  ;;  %v3843_v33 = vrot.slane %v3842_v36, 4  ;;  %v3857_v41 = vrot.slane %v3856_v30, 4  ;;  %v7720_v48 = vrot.slane %v3907_v43, 5 }
  0xfd   : > { %v3913_v23 = vrot.slane %v3911_v3, 4  ;;  %v3867_v19 = vrot.slane %v3866_v16, 4  ;;  %v3871_v21 = vrot.slane %v3869_v13, 5  ;;  %v3881_v10 = vrot.slane %v3880_v24, 4 }
  0xfe   : > { %5921 = vmatmul.mubr.msk.bf16.vlgmr.msra.gmra.mrb[0].mxu0 %vm683_vm3, %v7467_v56  ;;  %v3903_v56 = vrot.slane %v3901_v53, 5  ;;  %v3895_v6 = vrot.slane %v3893_v63, 5  ;;  %v7723_v53 = vld [vmem:[%s6598_s11 + $0xa4] sm:$0x1]  ;;  %v8437_v26 = vrot.slane %v7626_v22, 5  ;;  %v3814_v36 = vsel %vm6617_vm2, %v3809_v55, %v7668_v27 }
  0xff   : > { %5767 = vmatmul.mubr.msk.bf16.gmra.mrb[16].mxu1 %vm683_vm3, %v8435_v51  ;;  %5953 = vmatpush3.bf16.msra.mxu0 %v7194_v46  ;;  %v5406_v46 = vld [vmem:[%s6598_s11 + $0xa8] sm:$0xf]  ;;  %v3891_v51 = vrot.slane %v3890_v57, 4  ;;  %v3824_v30 = vsel %vm6617_vm2, %v3819_v29, %v3823_v49  ;;  %v3838_v43 = vsel %vm6617_vm2, %v3833_v9, %v7681_v58  ;;  %v3848_v22 = vsel %vm6617_vm2, %v3843_v33, %v3847_v25 }
 0x100   : > { %5770 = vmatprep.mubr.msk.bf16.mxu1 %vm683_vm3, %v8436_v52  ;;  %5924 = vmatprep.mubr.msk.bf16.mxu0 %vm683_vm3, %v7471_v4  ;;  %v3904_v52 = vor.u32 %v3903_v56, %v3900_v12  ;;  %v7726_v4 = vld [vmem:[%s6598_s11 + $0xac] sm:$0xf]  ;;  %v3922_v7 = vshrl.u32 %v5406_v46, 16  ;;  %v3925_v39 = vshll.u32 %v5406_v46, 16  ;;  %v7733_v45 = vsel %vm6839_vm6, %v7637_v54, %v8437_v26 }
 0x101   : > { %v3862_v54 = vsel %vm6617_vm2, %v3857_v41, %v7686_v31  ;;  %v3914_v3 = vor.u32 %v3913_v23, %v7720_v48  ;;  %v3917_v16 = vshll.u32 %v7723_v53, 16  ;;  %v3872_v27 = vsel %vm6617_vm2, %v3867_v19, %v3871_v21  ;;  %v5457_v31 = vld [vmem:[%s6598_s11 + $0x48] sm:$0xe]  ;;  %v5460_v26 = vld [vmem:[%s6598_s11 + $0x6c] sm:$0xe] }
 0x102   : > { %v3886_v58 = vsel %vm6617_vm2, %v3881_v10, %v7694_v59  ;;  %v3931_v13 = vshll.u32 %v7726_v4, 16  ;;  %v3935_v24 = vshrl.u32 %v7726_v4, 16  ;;  %v8438_v63 = vcombine.low %v7437_v32, %v7447_v5  ;;  %v7769_v59 = vld [vmem:[%s6598_s11 + $0xb0] sm:$0x1] }
 0x103   : > { %v3905_v49 = vrot.slane %v3904_v52, 4  ;;  %v3924_v57 = vrot.slane %v3922_v7, 4  ;;  %v3927_v12 = vrot.slane %v3925_v39, 5  ;;  %v8439_v56 = vcombine.low %v7547_v61, %v7559_v40  ;;  %v5409_v40 = vld [vmem:[%s6598_s11 + $0xb4] sm:$0xf] }
 0x104   : > { %v8440_v32 = vsel %vm6617_vm2, %v7605_v14, %v7607_v15  ;;  %v8441_v5 = vsel %vm6617_vm2, %v7603_v11, %v7531_v60  ;;  %v5068_v55 = vcombine.low %v7635_v1, %v7733_v45  ;;  %v7787_v29 = vcombine.low %v3814_v36, %v3824_v30  ;;  %v5458_v15 = vld [vmem:[%s6598_s11 + $0x54] sm:$0xe] }
 0x105   : > { %v7789_v61 = vcombine.low %v3838_v43, %v3848_v22  ;;  %v7792_v9 = vcombine.low %v3862_v54, %v3872_v27  ;;  %v3915_v25 = vrot.slane %v3914_v3, 4  ;;  %v3919_v46 = vrot.slane %v3917_v16, 5  ;;  %v8443_v16 = vld [vmem:[#allocation11_spill] sm:$0xff] }
 0x106   : > { %5925 = vmatmul.mubr.msk.bf16.gmra.mrb[4].mxu0 %vm683_vm3, %v7601_v44  ;;  %v3896_v44 = vsel %vm6617_vm2, %v3891_v51, %v3895_v6  ;;  %v5473_v14 = vrot.slane %v5457_v31, 9  ;;  %v7797_v60 = vrot.slane %v3931_v13, 5  ;;  %v3937_v11 = vrot.slane %v3935_v24, 4  ;;  %v5459_v6 = vld [vmem:[%s6598_s11 + $0x60] sm:$0xe]  ;;  %v8444_v13 = vld [vmem:[#allocation12_spill] sm:$0xff] }
 0x107   : > { %5771 = vmatmul.mubr.msk.bf16.gmra.mrb[20].mxu1 %vm683_vm3, %v8438_v63  ;;  %5928 = vmatprep.mubr.msk.bf16.mxu0 %vm683_vm3, %v7611_v38  ;;  %v5426_v38 = vcombine.low %v8441_v5, %v8440_v32  ;;  %v7795_v33 = vcombine.low %v3886_v58, %v3896_v44  ;;  %v3941_v41 = vshll.u32 %v7769_v59, 16  ;;  %v3910_v23 = vsel %vm6617_vm2, %v3905_v49, %v7720_v48  ;;  %v8445_v24 = vld [vmem:[#allocation13_spill] sm:$0xff]  ;;  %v8447_v63 = vld [vmem:[#allocation14_spill] sm:$0xff] }
 0x108   : > { %5774 = vmatprep.mubr.msk.bf16.mxu1 %vm683_vm3, %v8439_v56  ;;  %v3928_v19 = vor.u32 %v3927_v12, %v3924_v57  ;;  %v4409_v21 = vrot.slane %v7430_v20, 5  ;;  %v4412_v10 = vrot.slane %v7484_v35, 5  ;;  %v3946_v51 = vshrl.u32 %v5409_v40, 16  ;;  %v7819_v35 = vld [vmem:[%s6598_s11 + $0xb8] sm:$0xf] }
 0x109   : > { %v5474_v52 = vrot.slane %v5458_v15, 9  ;;  %v4416_v7 = vrot.slane %v7441_v18, 5  ;;  %v4419_v39 = vrot.slane %v7508_v37, 5  ;;  %v3920_v36 = vsel %vm6617_vm2, %v3915_v25, %v3919_v46  ;;  %v8448_v49 = vld [vmem:[#allocation18_spill] sm:$0xff]  ;;  %v5412_v12 = vld [vmem:[%s6598_s11 + $0xc0] sm:$0xf] }
 0x10a   : > { %v3949_v30 = vshll.u32 %v5409_v40, 16  ;;  %v7813_v48 = vsel %vm6839_vm6, %v5473_v14, %v4409_v21  ;;  %v4411_v43 = vrot.slane %v4409_v21, 4  ;;  %v3938_v20 = vor.u32 %v3937_v11, %v7797_v60  ;;  %v5461_v14 = vld [vmem:[%s6598_s11 + $0x78] sm:$0xe] }
 0x10b   : > { %v7823_v37 = vsel %vm6839_vm6, %v5474_v52, %v4416_v7  ;;  %v4418_v18 = vrot.slane %v4416_v7, 4  ;;  %v5475_v22 = vrot.slane %v5459_v6, 9  ;;  %v8442_v54 = vcombine.low %v7566_v42, %v7570_v62  ;;  %v6343_v6 = vld [vmem:[%s6598_s11 + $0xc] sm:$0xff]  }
 0x10c   : > { %v4423_v3 = vrot.slane %v7490_v8, 5  ;;  %v4426_v27 = vrot.slane %v8443_v16, 5  ;;  %v5476_v58 = vrot.slane %v5460_v26, 9  ;;  %v8446_v31 = vcombine.low %v8444_v13, %v8445_v24  ;;  %v8450_v13 = vld [vmem:[#allocation6_spill] sm:$0xff]  ;;  %v8451_v24 = vld [vmem:[#allocation7_spill] sm:$0xff] }
 0x10d   : > { %v7844_v62 = vsel %vm6839_vm6, %v4418_v18, %v4419_v39  ;;  %v4430_v44 = vrot.slane %v8447_v63, 5  ;;  %v4433_v8 = vrot.slane %v8448_v49, 5  ;;  %v3955_v57 = vshll.u32 %v7819_v35, 16  ;;  %v7881_v39 = vld [vmem:[%s6598_s11 + $0xc4] sm:$0xf]  ;;  %v8452_v49 = vld [vmem:[#allocation16_spill] sm:$0xff] }
 0x10e   : > { %5929 = vmatmul.mubr.msk.bf16.gmra.mrb[8].mxu0 %vm683_vm3, %v7615_v47  ;;  %v7832_v47 = vsel %vm6839_vm6, %v4411_v43, %v4412_v10  ;;  %v5492_v56 = vcombine.low %v7823_v37, %v7844_v62  ;;  %v7854_v32 = vsel %vm6839_vm6, %v5475_v22, %v4423_v3  ;;  %v4425_v5 = vrot.slane %v4423_v3, 4  ;;  %v5180_v10 = vld [vmem:[%s6598_s11 + $0x78] sm:$0xf]  ;;  %v8449_v22 = vld [vmem:[#allocation15_spill] sm:$0xff] }
 0x10f   : > { %5775 = vmatmul.mubr.msk.bf16.gmra.mrb[24].mxu1 %vm683_vm3, %v8442_v54  ;;  %5932 = vmatprep.mubr.msk.bf16.mxu0 %vm683_vm3, %v5426_v38  ;;  %v5491_v42 = vcombine.low %v7813_v48, %v7832_v47  ;;  %v7856_v38 = vrot.slane %v3941_v41, 5  ;;  %v3959_v40 = vshrl.u32 %v7819_v35, 16  ;;  %v7861_v25 = vsel %vm6839_vm6, %v5476_v58, %v4430_v44  ;;  %v6408_v62 = vld [vmem:[%s6598_s11 + $0xa0] sm:$0xf] }
 0x110   : > { %5778 = vmatprep.mubr.msk.bf16.mxu1 %vm683_vm3, %v8446_v31  ;;  %v4432_v46 = vrot.slane %v4430_v44, 4  ;;  %v7864_v15 = vcombine.low %v3910_v23, %v3920_v36  ;;  %v7866_v11 = vrot.slane %v3928_v19, 4  ;;  %v7868_v21 = vrot.slane %v3946_v51, 4 }
 0x111   : > { %v7872_v41 = vsel %vm6839_vm6, %v4425_v5, %v4426_v27  ;;  %v7876_v52 = vrot.slane %v3938_v20, 4  ;;  %v7878_v7 = vrot.slane %v3949_v30, 5  ;;  %v7889_v51 = vrot.slane %v3955_v57, 5  ;;  %v5462_v20 = vld [vmem:[%s6598_s11 + $0x84] sm:$0xe] }
 0x112   : > { %v5493_v23 = vcombine.low %v7854_v32, %v7872_v41  ;;  %v7887_v19 = vsel %vm6839_vm6, %v4432_v46, %v4433_v8  ;;  %v3970_v26 = vshrl.u32 %v5412_v12, 16  ;;  %v5477_v43 = vrot.slane %v5461_v14, 9  ;;  %v7897_v30 = vld [vmem:[%s6598_s11 + $0xbc] sm:$0x1]  ;;  %v5415_v5 = vld [vmem:[%s6598_s11 + $0xcc] sm:$0xf] }
 0x113   : > { %v5494_v36 = vcombine.low %v7861_v25, %v7887_v19  ;;  %v3973_v18 = vshll.u32 %v5412_v12, 16  ;;  %v4437_v54 = vrot.slane %v8449_v22, 5  ;;  %v4440_v3 = vrot.slane %v7671_v34, 5  ;;  %v6344_v14 = vld [vmem:[%s6598_s11 + $0x18] sm:$0xff]   ;;  %v5463_v22 = vld [vmem:[%s6598_s11 + $0x90] sm:$0xe] }
 0x114   : > { %v2280_v16 = vshrl.u32 %v5180_v10, 16  ;;  %v3979_v27 = vshll.u32 %v7881_v39, 16  ;;  %v2283_v58 = vshll.u32 %v5180_v10, 16  ;;  %v2302_v34 = vsel %vm6617_vm2, %v8451_v24, %v8450_v13  ;;  %v8453_v24 = vld [vmem:[#allocation17_spill] sm:$0xff]  ;;  %v6412_v19 = vld [vmem:[%s6598_s11 + $0xac] sm:$0xf] }
 0x115   : > { %v7916_v1 = vsel %vm6839_vm6, %v5477_v43, %v4437_v54  ;;  %v4439_v45 = vrot.slane %v4437_v54, 4  ;;  %v3961_v31 = vrot.slane %v3959_v40, 4  ;;  %v3965_v63 = vshll.u32 %v7897_v30, 16 }
 0x116   : > { %5933 = vmatmul.mubr.msk.bf16.gmra.mrb[12].mxu0 %vm683_vm3, %v7787_v29  ;;  %v3983_v29 = vshrl.u32 %v7881_v39, 16  ;;  %v2285_v44 = vrot.slane %v2283_v58, 5  ;;  %v4444_v8 = vrot.slane %v8452_v49, 5  ;;  %v3934_v57 = vsel %vm6617_vm2, %v7866_v11, %v7797_v60  ;;  %v6345_v60 = vld [vmem:[%s6598_s11 + $0x24] sm:$0xff]  }
 0x117   : > { %5779 = vmatmul.mubr.msk.bf16.gmra.mrb[28].mxu1 %vm683_vm3, %v5068_v55  ;;  %5936 = vmatprep.mubr.msk.bf16.mxu0 %vm683_vm3, %v7789_v61  ;;  %v2282_v55 = vrot.slane %v2280_v16, 4  ;;  %v5478_v61 = vrot.slane %v5462_v20, 9  ;;  %v3952_v12 = vor.u32 %v7878_v7, %v7868_v21  ;;  %v7929_v46 = vsel %vm6839_vm6, %v4439_v45, %v4440_v3  ;;  %v7940_v7 = vld [vmem:[%s6598_s11 + $0xd0] sm:$0xf] }
 0x118   : > { %5784 = vmatprep.mubr.msk.bf16.mxu1 %vm683_vm3, %v6343_v6  ;;  %v4447_v40 = vrot.slane %v7684_v17, 5  ;;  %v3972_v10 = vrot.slane %v3970_v26, 4  ;;  %v3975_v6 = vrot.slane %v3973_v18, 5  ;;  %v5495_v43 = vcombine.low %v7916_v1, %v7929_v46  ;;  %v7952_v18 = vld [vmem:[%s6598_s11 + $0xc8] sm:$0x1] }
 0x119   : > { %v2286_v20 = vor.u32 %v2285_v44, %v2282_v55  ;;  %v7937_v11 = vrot.slane %v3979_v27, 5  ;;  %v3985_v21 = vrot.slane %v3983_v29, 4  ;;  %v7944_v54 = vsel %vm6839_vm6, %v5478_v61, %v4444_v8  ;;  %v8454_v55 = vld [vmem:[#allocation5_spill] sm:$0xff] }
 0x11a   : > { %v4446_v3 = vrot.slane %v4444_v8, 4  ;;  %v3944_v17 = vsel %vm6617_vm2, %v7876_v52, %v7856_v38  ;;  %v3962_v26 = vor.u32 %v3961_v31, %v7889_v51  ;;  %v3994_v16 = vshrl.u32 %v5415_v5, 16  ;;  %v8455_v31 = vld [vmem:[#allocation10_spill] sm:$0xff] }
 0x11b   : > { %v2287_v27 = vrot.slane %v2286_v20, 4  ;;  %v3997_v29 = vshll.u32 %v5415_v5, 16  ;;  %v5479_v13 = vrot.slane %v5463_v22, 9  ;;  %v4451_v45 = vrot.slane %v8453_v24, 5 }
 0x11c   : > { %v7958_v58 = vsel %vm6839_vm6, %v4446_v3, %v4447_v40  ;;  %v4003_v38 = vshll.u32 %v7940_v7, 16  ;;  %v4007_v52 = vshrl.u32 %v7940_v7, 16  ;;  %v3976_v44 = vor.u32 %v3975_v6, %v3972_v10  ;;  %v5464_v10 = vld [vmem:[%s6598_s11 + $0x9c] sm:$0xe]  ;;  %v6346_v6 = vld [vmem:[%s6598_s11 + $0x30] sm:$0xff]  }
 0x11d   : > { %v5496_v61 = vcombine.low %v7944_v54, %v7958_v58  ;;  %v3989_v49 = vshll.u32 %v7952_v18, 16  ;;  %v3967_v5 = vrot.slane %v3965_v63, 5  ;;  %v7979_v40 = vsel %vm6839_vm6, %v5479_v13, %v4451_v45  ;;  %v6347_v13 = vld [vmem:[%s6598_s11 + $0x3c] sm:$0xff]  }
 0x11e   : > { %5937 = vmatmul.mubr.msk.bf16.gmra.mrb[16].mxu0 %vm683_vm3, %v7792_v9  ;;  %v2292_v9 = vsel %vm6617_vm2, %v2287_v27, %v8454_v55  ;;  %v4454_v20 = vrot.slane %v7692_v0, 5  ;;  %v5432_v22 = vcombine.low %v3934_v57, %v3944_v17  ;;  %v3953_v3 = vrot.slane %v3952_v12, 4 }
 0x11f   : > { %5785 = vmatmul.mubr.msk.bf16.vlgmr.msra.gmra.mrb[0].mxu1 %vm683_vm3, %v6344_v14  ;;  %5940 = vmatprep.mubr.msk.bf16.mxu0 %vm683_vm3, %v7795_v33  ;;  %v3986_v33 = vor.u32 %v3985_v21, %v7937_v11  ;;  %v7975_v8 = vcombine.low %v2292_v9, %v2302_v34  ;;  %v4453_v14 = vrot.slane %v4451_v45, 4  ;;  %v3963_v27 = vrot.slane %v3962_v26, 4  ;;  %v7985_v21 = vld [vmem:[%s6598_s11 + $0xd4] sm:$0x1]  ;;  %v5453_v9 = vld [vmem:[%s6598_s11 + $0x18] sm:$0xe] }
 0x120   : > { %5987 = vmatpush3.bf16.msra.mxu1 %v8455_v31  ;;  %5788 = vmatprep.mubr.msk.bf16.mxu1 %vm683_vm3, %v6345_v60  ;;  %v3996_v60 = vrot.slane %v3994_v16, 4  ;;  %v3999_v24 = vrot.slane %v3997_v29, 5  ;;  %v7987_v34 = vrot.slane %v4003_v38, 5  ;;  %v4009_v55 = vrot.slane %v4007_v52, 4 }
 0x121   : > { %v7991_v63 = vsel %vm6839_vm6, %v4453_v14, %v4454_v20  ;;  %v3977_v45 = vrot.slane %v3976_v44, 4  ;;  %v3987_v0 = vrot.slane %v3986_v33, 4  ;;  %v3991_v57 = vrot.slane %v3989_v49, 5  ;;  %v6398_v33 = vld [vmem:[%s6598_s11 + $0x1c] sm:$0xf] }
 0x122   : > { %v5497_v12 = vcombine.low %v7979_v40, %v7991_v63  ;;  %v5480_v17 = vrot.slane %v5464_v10, 9  ;;  %v4458_v26 = vrot.slane %v7689_v50, 5  ;;  %v3958_v16 = vsel %vm6617_vm2, %v3953_v3, %v7889_v51  ;;  %v5465_v14 = vld [vmem:[%s6598_s11 + $0xa8] sm:$0xe] }
 0x123   : > { %v3968_v29 = vsel %vm6617_vm2, %v3963_v27, %v3967_v5  ;;  %v4013_v38 = vshll.u32 %v7985_v21, 16  ;;  %v4461_v52 = vrot.slane %v7723_v53, 5  ;;  %v4000_v50 = vor.u32 %v3999_v24, %v3996_v60  ;;  %v6348_v60 = vld [vmem:[%s6598_s11 + $0x48] sm:$0xff]   ;;  %v6399_v24 = vld [vmem:[%s6598_s11 + $0x20] sm:$0x1] }
 0x124   : > { %v8012_v51 = vsel %vm6839_vm6, %v5480_v17, %v4458_v26  ;;  %v4460_v31 = vrot.slane %v4458_v26, 4  ;;  %v3982_v53 = vsel %vm6617_vm2, %v3977_v45, %v7937_v11  ;;  %v3992_v44 = vsel %vm6617_vm2, %v3987_v0, %v3991_v57  ;;  %v5466_v26 = vld [vmem:[%s6598_s11 + $0xb4] sm:$0xe] }
 0x125   : > { %v4381_v49 = vrot.slane %v6398_v33, 5  ;;  %v5433_v20 = vcombine.low %v3958_v16, %v3968_v29  ;;  %v5469_v3 = vrot.slane %v5453_v9, 9  ;;  %v5434_v11 = vcombine.low %v3982_v53, %v3992_v44  ;;  %v5455_v33 = vld [vmem:[%s6598_s11 + $0x30] sm:$0xe] }
 0x126   : > { %5941 = vmatmul.mubr.msk.bf16.gmra.mrb[20].mxu0 %vm683_vm3, %v7864_v15  ;;  %v4010_v15 = vor.u32 %v4009_v55, %v7987_v34  ;;  %v8023_v5 = vsel %vm6839_vm6, %v4460_v31, %v4461_v52  ;;  %v4001_v10 = vrot.slane %v4000_v50, 4  ;;  %v4384_v55 = vrot.slane %v6399_v24, 5  ;;  %v5454_v52 = vld [vmem:[%s6598_s11 + $0x24] sm:$0xe]  ;;  %v6400_v50 = vld [vmem:[%s6598_s11 + $0x28] sm:$0xf] }
 0x127   : > { %5789 = vmatmul.mubr.msk.bf16.gmra.mrb[4].mxu1 %vm683_vm3, %v6346_v6  ;;  %5944 = vmatprep.mubr.msk.bf16.mxu0 %vm683_vm3, %v5432_v22  ;;  %v4015_v22 = vrot.slane %v4013_v38, 5  ;;  %v5498_v27 = vcombine.low %v8012_v51, %v8023_v5  ;;  %v4383_v45 = vrot.slane %v4381_v49, 4  ;;  %v5481_v0 = vrot.slane %v5465_v14, 9  ;;  %v6401_v31 = vld [vmem:[%s6598_s11 + $0x34] sm:$0xf] }
 0x128   : > { %5792 = vmatprep.mubr.msk.bf16.mxu1 %vm683_vm3, %v6347_v13  ;;  %v4011_v6 = vrot.slane %v4010_v15, 4  ;;  %v6349_v13 = vld [vmem:[%s6598_s11 + $0x54] sm:$0xff]   ;;  %v4465_v57 = vrot.slane %v7726_v4, 5  ;;  %v4468_v17 = vrot.slane %v7769_v59, 5  ;;  %v4006_v4 = vsel %vm6617_vm2, %v4001_v10, %v7987_v34  ;;  %v6350_v10 = vld [vmem:[%s6598_s11 + $0x60] sm:$0xff]  }
 0x129   : > { %v4382_v38 = vsel %vm6839_vm6, %v5469_v3, %v4381_v49  ;;  %v4388_v15 = vrot.slane %v6400_v50, 5  ;;  %v4385_v9 = vsel %vm6839_vm6, %v4383_v45, %v4384_v55  ;;  %v4395_v53 = vrot.slane %v6401_v31, 5  ;;  %v6402_v3 = vld [vmem:[%s6598_s11 + $0x2c] sm:$0x1]  ;;  %v6417_v51 = vld [vmem:[%s6598_s11 + $0xc8] sm:$0x1] }
 0x12a   : > { %v8037_v16 = vsel %vm6839_vm6, %v5481_v0, %v4465_v57  ;;  %v4467_v29 = vrot.slane %v4465_v57, 4  ;;  %v4016_v59 = vsel %vm6617_vm2, %v4011_v6, %v4015_v22  ;;  %v5482_v44 = vrot.slane %v5466_v26, 9  ;;  %v6351_v45 = vld [vmem:[%s6598_s11 + $0x6c] sm:$0xff]   ;;  %v5467_v26 = vld [vmem:[%s6598_s11 + $0xc0] sm:$0xe] }
 0x12b   : > { %v4472_v14 = vrot.slane %v7819_v35, 5  ;;  %v5470_v22 = vrot.slane %v5454_v52, 9  ;;  %v5487_v6 = vcombine.low %v4382_v38, %v4385_v9  ;;  %v4390_v24 = vrot.slane %v4388_v15, 4  ;;  %v6403_v35 = vld [vmem:[%s6598_s11 + $0x38] sm:$0x1]  ;;  %v8456_v38 = vld [vmem:[#allocation8_spill] sm:$0xff] }
 0x12c   : > { %v8056_v34 = vsel %vm6839_vm6, %v4467_v29, %v4468_v17  ;;  %v5471_v0 = vrot.slane %v5455_v33, 9  ;;  %v4397_v57 = vrot.slane %v4395_v53, 4  ;;  %v4398_v17 = vrot.slane %v6403_v35, 5 }
 0x12d   : > { %v5499_v49 = vcombine.low %v8037_v16, %v8056_v34  ;;  %v8067_v55 = vsel %vm6839_vm6, %v5482_v44, %v4472_v14  ;;  %v4402_v52 = vrot.slane %v8456_v38, 5  ;;  %v5483_v50 = vrot.slane %v5467_v26, 9  ;;  %v5456_v44 = vld [vmem:[%s6598_s11 + $0x3c] sm:$0xe]  ;;  %v6404_v38 = vld [vmem:[%s6598_s11 + $0x70] sm:$0xf] }
 0x12e   : > { %5945 = vmatmul.mubr.msk.bf16.gmra.mrb[24].mxu0 %vm683_vm3, %v5433_v20  ;;  %v5435_v20 = vcombine.low %v4006_v4, %v4016_v59  ;;  %v4389_v4 = vsel %vm6839_vm6, %v5470_v22, %v4388_v15  ;;  %v4396_v9 = vsel %vm6839_vm6, %v5471_v0, %v4395_v53  ;;  %v4399_v31 = vsel %vm6839_vm6, %v4397_v57, %v4398_v17  ;;  %v5177_v22 = vld [vmem:[%s6598_s11 + $0x6c] sm:$0xf] }
 0x12f   : > { %5793 = vmatmul.mubr.msk.bf16.gmra.mrb[8].mxu1 %vm683_vm3, %v6348_v60  ;;  %5948 = vmatprep.mubr.msk.bf16.mxu0 %vm683_vm3, %v5434_v11  ;;  %v4391_v60 = vrot.slane %v6402_v3, 5  ;;  %v4475_v11 = vrot.slane %v7897_v30, 5  ;;  %v4479_v33 = vrot.slane %v7881_v39, 5  ;;  %v4482_v15 = vrot.slane %v7952_v18, 5 }
 0x130   : > { %5796 = vmatprep.mubr.msk.bf16.mxu1 %vm683_vm3, %v6349_v13  ;;  %v4474_v13 = vrot.slane %v4472_v14, 4  ;;  %v5468_v14 = vld [vmem:[%s6598_s11 + $0xcc] sm:$0xe]  ;;  %v4404_v53 = vrot.slane %v4402_v52, 4  ;;  %v2256_v0 = vshrl.u32 %v5177_v22, 16  ;;  %v2259_v57 = vshll.u32 %v5177_v22, 16 }
 0x131   : > { %v4392_v59 = vsel %vm6839_vm6, %v4390_v24, %v4391_v60  ;;  %v8098_v3 = vsel %vm6839_vm6, %v5483_v50, %v4479_v33  ;;  %v4481_v60 = vrot.slane %v4479_v33, 4  ;;  %v8457_v24 = vld [vmem:[#allocation9_spill] sm:$0xff]  ;;  %v5484_v18 = vrot.slane %v5468_v14, 9 }
 0x132   : > { %v8074_v29 = vsel %vm6839_vm6, %v4474_v13, %v4475_v11  ;;  %v6352_v11 = vld [vmem:[%s6598_s11 + $0x78] sm:$0xff]   ;;  %v4405_v13 = vrot.slane %v8457_v24, 5  ;;  %v4486_v17 = vrot.slane %v7940_v7, 5  ;;  %v4489_v26 = vrot.slane %v7985_v21, 5 }
 0x133   : > { %v5500_v30 = vcombine.low %v8067_v55, %v8074_v29  ;;  %v8105_v39 = vsel %vm6839_vm6, %v4481_v60, %v4482_v15  ;;  %v2265_v50 = vshll.u32 %v6404_v38, 16  ;;  %v6354_v15 = vld [vmem:[%s6598_s11 + $0x90] sm:$0xff]   ;;  %v6355_v60 = vld [vmem:[%s6598_s11 + $0x9c] sm:$0xff]   ;;  %v2443_v5 = vshll.u32 %v6417_v51, 16 }
 0x134   : > { %v5501_v35 = vcombine.low %v8098_v3, %v8105_v39  ;;  %v8122_v7 = vsel %vm6839_vm6, %v5484_v18, %v4486_v17  ;;  %v4488_v21 = vrot.slane %v4486_v17, 4  ;;  %v5186_v17 = vld [vmem:[%s6598_s11 + $0x90] sm:$0xf] }
 0x135   : > { %v2267_v14 = vrot.slane %v2265_v50, 5 }
 0x136   : > { %5949 = vmatmul.mubr.msk.bf16.gmra.mrb[28].mxu0 %vm683_vm3, %v5435_v20  ;;  %v5488_v20 = vcombine.low %v4389_v4, %v4392_v59  ;;  %v4406_v59 = vsel %vm6839_vm6, %v4404_v53, %v4405_v13 }
 0x137   : > { %5797 = vmatmul.mubr.msk.bf16.gmra.mrb[12].mxu1 %vm683_vm3, %v6350_v10  ;;  %5954 = vmatprep.mubr.msk.bf16.mxu0 %vm683_vm3, %v5487_v6  ;;  %v5489_v10 = vcombine.low %v4396_v9, %v4399_v31  ;;  %v5472_v6 = vrot.slane %v5456_v44, 9  ;;  %v2269_v9 = vshrl.u32 %v6404_v38, 16  ;;  %v2258_v31 = vrot.slane %v2256_v0, 4  ;;  %v6357_v38 = vld [vmem:[%s6598_s11 + $0xb4] sm:$0xff]  }
 0x138   : > { %5800 = vmatprep.mubr.msk.bf16.mxu1 %vm683_vm3, %v6351_v45  ;;  %v6353_v45 = vld [vmem:[%s6598_s11 + $0x84] sm:$0xff]   ;;  %v2261_v44 = vrot.slane %v2259_v57, 5 }
 0x139   : > { %v4403_v4 = vsel %vm6839_vm6, %v5472_v6, %v4402_v52  ;;  %v8126_v52 = vsel %vm6839_vm6, %v4488_v21, %v4489_v26  ;;  %v6405_v6 = vld [vmem:[%s6598_s11 + $0x74] sm:$0x1]  ;;  %v6356_v26 = vld [vmem:[%s6598_s11 + $0xa8] sm:$0xff]   ;;  %v2328_v21 = vshrl.u32 %v5186_v17, 16 }
 0x13a   : > { %v5490_v33 = vcombine.low %v4403_v4, %v4406_v59  ;;  %v5502_v22 = vcombine.low %v8122_v7, %v8126_v52  ;;  %v2275_v53 = vshll.u32 %v6405_v6, 16  ;;  %v5189_v59 = vld [vmem:[%s6598_s11 + $0x9c] sm:$0xf]  ;;  %v6409_v6 = vld [vmem:[%s6598_s11 + $0x8c] sm:$0x1] }
 0x13c   : > { %v2277_v48 = vrot.slane %v2275_v53, 5  ;;  %v2323_v53 = vshll.u32 %v6409_v6, 16 }
 0x13e   : > { %5955 = vmatmul.mubr.msk.bf16.vlgmr.msra.gmra.mrb[0].mxu0 %vm683_vm3, %v5488_v20  ;;  %v2271_v20 = vrot.slane %v2269_v9, 4 }
 0x13f   : > { %5801 = vmatmul.mubr.msk.bf16.gmra.mrb[16].mxu1 %vm683_vm3, %v6352_v11  ;;  %5958 = vmatprep.mubr.msk.bf16.mxu0 %vm683_vm3, %v5489_v10  ;;  %v5183_v11 = vld [vmem:[%s6598_s11 + $0x84] sm:$0xf]  ;;  %v2262_v10 = vor.u32 %v2261_v44, %v2258_v31  ;;  %v2331_v31 = vshll.u32 %v5186_v17, 16 }
 0x140   : > { %5804 = vmatprep.mubr.msk.bf16.mxu1 %vm683_vm3, %v6353_v45  ;;  %v2272_v2 = vor.u32 %v2271_v20, %v2267_v14  ;;  %v2304_v24 = vshrl.u32 %v5183_v11, 16  ;;  %v2307_v13 = vshll.u32 %v5183_v11, 16  ;;  %v6406_v45 = vld [vmem:[%s6598_s11 + $0x88] sm:$0xf]  ;;  %v2355_v11 = vshll.u32 %v5189_v59, 16 }
 0x141   : > { %v2313_v18 = vshll.u32 %v6406_v45, 16  ;;  %v2317_v0 = vshrl.u32 %v6406_v45, 16  ;;  %v2263_v57 = vrot.slane %v2262_v10, 4  ;;  %v2361_v10 = vshll.u32 %v6408_v62, 16 }
 0x142   : > { %v2273_v4 = vrot.slane %v2272_v2, 4  ;;  %v2306_v47 = vrot.slane %v2304_v24, 4  ;;  %v2330_v24 = vrot.slane %v2328_v21, 4  ;;  %v2333_v32 = vrot.slane %v2331_v31, 5  ;;  %v6411_v31 = vld [vmem:[%s6598_s11 + $0xa4] sm:$0x1] }
 0x143   : > { %v8146_v50 = vrot.slane %v2313_v18, 5  ;;  %v2319_v9 = vrot.slane %v2317_v0, 4  ;;  %v2268_v44 = vsel %vm6617_vm2, %v2263_v57, %v2267_v14  ;;  %v2357_v45 = vrot.slane %v2355_v11, 5  ;;  %v6358_v18 = vld [vmem:[%s6598_s11 + $0xc0] sm:$0xff]  }
 0x144   : > { %v2278_v14 = vsel %vm6617_vm2, %v2273_v4, %v2277_v48  ;;  %v8169_v17 = vrot.slane %v2361_v10, 5  ;;  %v5192_v4 = vld [vmem:[%s6598_s11 + $0xa8] sm:$0xf] }
 0x145   : > { %v2320_v2 = vor.u32 %v2319_v9, %v8146_v50  ;;  %v5211_v0 = vcombine.low %v2268_v44, %v2278_v14  ;;  %v2371_v44 = vshll.u32 %v6411_v31, 16  ;;  %v2379_v25 = vshll.u32 %v5192_v4, 16 }
 0x146   : > { %5959 = vmatmul.mubr.msk.bf16.gmra.mrb[4].mxu0 %vm683_vm3, %v5490_v33  ;;  %v6407_v33 = vld [vmem:[%s6598_s11 + $0x94] sm:$0xf] }
 0x147   : > { %5805 = vmatmul.mubr.msk.bf16.gmra.mrb[20].mxu1 %vm683_vm3, %v6354_v15  ;;  %5962 = vmatprep.mubr.msk.bf16.mxu0 %vm683_vm3, %v5491_v42  ;;  %v2309_v42 = vrot.slane %v2307_v13, 5  ;;  %v2337_v15 = vshll.u32 %v6407_v33, 16  ;;  %v2341_v20 = vshrl.u32 %v6407_v33, 16  ;;  %v2321_v48 = vrot.slane %v2320_v2, 4 }
 0x148   : > { %5808 = vmatprep.mubr.msk.bf16.mxu1 %vm683_vm3, %v6355_v60  ;;  %v2352_v60 = vshrl.u32 %v5189_v59, 16  ;;  %v6410_v59 = vld [vmem:[%s6598_s11 + $0x98] sm:$0x1]  ;;  %v2376_v33 = vshrl.u32 %v5192_v4, 16  ;;  %v5198_v4 = vld [vmem:[%s6598_s11 + $0xc0] sm:$0xf] }
 0x149   : > { %v2310_v37 = vor.u32 %v2309_v42, %v2306_v47  ;;  %v8166_v41 = vrot.slane %v2337_v15, 5  ;;  %v2325_v47 = vrot.slane %v2323_v53, 5  ;;  %v2334_v42 = vor.u32 %v2333_v32, %v2330_v24  ;;  %v5195_v15 = vld [vmem:[%s6598_s11 + $0xb4] sm:$0xf] }
 0x14a   : > { %v2354_v13 = vrot.slane %v2352_v60, 4  ;;  %v2389_v60 = vshrl.u32 %v6412_v19, 16  ;;  %v2400_v1 = vshrl.u32 %v5195_v15, 16  ;;  %v2403_v46 = vshll.u32 %v5195_v15, 16 }
 0x14b   : > { %v2311_v57 = vrot.slane %v2310_v37, 4  ;;  %v2326_v14 = vsel %vm6617_vm2, %v2321_v48, %v2325_v47  ;;  %v2335_v37 = vrot.slane %v2334_v42, 4  ;;  %v2373_v53 = vrot.slane %v2371_v44, 5 }
 0x14c   : > { %v2358_v21 = vor.u32 %v2357_v45, %v2354_v13  ;;  %v2378_v24 = vrot.slane %v2376_v33, 4  ;;  %v2391_v45 = vrot.slane %v2389_v60, 4  ;;  %v6416_v33 = vld [vmem:[%s6598_s11 + $0xbc] sm:$0x1] }
 0x14d   : > { %v2316_v11 = vsel %vm6617_vm2, %v2311_v57, %v8146_v50  ;;  %v2340_v48 = vsel %vm6617_vm2, %v2335_v37, %v8166_v41  ;;  %v2419_v40 = vshll.u32 %v6416_v33, 16 }
 0x14e   : > { %5963 = vmatmul.mubr.msk.bf16.gmra.mrb[8].mxu0 %vm683_vm3, %v5492_v56  ;;  %v2365_v56 = vshrl.u32 %v6408_v62, 16  ;;  %v2359_v6 = vrot.slane %v2358_v21, 4  ;;  %v5213_v50 = vcombine.low %v2316_v11, %v2326_v14 }
 0x14f   : > { %5809 = vmatmul.mubr.msk.bf16.gmra.mrb[24].mxu1 %vm683_vm3, %v6356_v26  ;;  %5966 = vmatprep.mubr.msk.bf16.mxu0 %vm683_vm3, %v5493_v23  ;;  %v2343_v23 = vrot.slane %v2341_v20, 4 }
 0x150   : > { %5812 = vmatprep.mubr.msk.bf16.mxu1 %vm683_vm3, %v6357_v38  ;;  %v2367_v26 = vrot.slane %v2365_v56, 4  ;;  %v2347_v38 = vshll.u32 %v6410_v59, 16  ;;  %v2364_v42 = vsel %vm6617_vm2, %v2359_v6, %v8169_v17  ;;  %v2445_v6 = vrot.slane %v2443_v5, 5 }
 0x151   : > { %v2344_v9 = vor.u32 %v2343_v23, %v8166_v41  ;;  %v2381_v23 = vrot.slane %v2379_v25, 5  ;;  %v6414_v41 = vld [vmem:[%s6598_s11 + $0xb0] sm:$0x1] }
 0x152   : > { %v2368_v20 = vor.u32 %v2367_v26, %v8169_v17  ;;  %v2349_v62 = vrot.slane %v2347_v38, 5  ;;  %v2395_v59 = vshll.u32 %v6414_v41, 16  ;;  %v2424_v38 = vshrl.u32 %v5198_v4, 16 }
 0x153   : > { %v2345_v2 = vrot.slane %v2344_v9, 4  ;;  %v2382_v58 = vor.u32 %v2381_v23, %v2378_v24  ;;  %v2427_v17 = vshll.u32 %v5198_v4, 16  ;;  %v6415_v9 = vld [vmem:[%s6598_s11 + $0xc4] sm:$0xf] }
 0x154   : > { %v2369_v32 = vrot.slane %v2368_v20, 4  ;;  %v2433_v21 = vshll.u32 %v6415_v9, 16  ;;  %v2437_v31 = vshrl.u32 %v6415_v9, 16  ;;  %v2397_v25 = vrot.slane %v2395_v59, 5 }
 0x155   : > { %v2350_v47 = vsel %vm6617_vm2, %v2345_v2, %v2349_v62  ;;  %v2383_v15 = vrot.slane %v2382_v58, 4  ;;  %v2421_v62 = vrot.slane %v2419_v40, 5 }
 0x156   : > { %5967 = vmatmul.mubr.msk.bf16.gmra.mrb[12].mxu0 %vm683_vm3, %v5494_v36  ;;  %v2385_v36 = vshll.u32 %v6412_v19, 16  ;;  %v2374_v54 = vsel %vm6617_vm2, %v2369_v32, %v2373_v53  ;;  %v5214_v63 = vcombine.low %v2340_v48, %v2350_v47  ;;  %v2426_v19 = vrot.slane %v2424_v38, 4 }
 0x157   : > { %5813 = vmatmul.mubr.msk.bf16.gmra.mrb[28].mxu1 %vm683_vm3, %v6358_v18  ;;  %5970 = vmatprep.mubr.msk.bf16.mxu0 %vm683_vm3, %v5495_v43  ;;  %v6413_v43 = vld [vmem:[%s6598_s11 + $0xb8] sm:$0xf]  ;;  %v2402_v18 = vrot.slane %v2400_v1, 4  ;;  %v2435_v60 = vrot.slane %v2433_v21, 5  ;;  %v2439_v11 = vrot.slane %v2437_v31, 4 }
 0x158   : > { %5834 = vmatprep.mubr.msk.bf16.mxu1 %vm683_vm3, %v5211_v0  ;;  %v2409_v10 = vshll.u32 %v6413_v43, 16  ;;  %v2413_v56 = vshrl.u32 %v6413_v43, 16  ;;  %v2387_v13 = vrot.slane %v2385_v36, 5  ;;  %v2405_v0 = vrot.slane %v2403_v46, 5 }
 0x159   : > { %v2429_v36 = vrot.slane %v2427_v17, 5 }
 0x15a   : > { %v2411_v57 = vrot.slane %v2409_v10, 5  ;;  %v2415_v26 = vrot.slane %v2413_v56, 4  ;;  %v2388_v1 = vsel %vm6617_vm2, %v2383_v15, %v2387_v13  ;;  %v2440_v10 = vor.u32 %v2439_v11, %v2435_v60 }
 0x15b   : > { %v2430_v43 = vor.u32 %v2429_v36, %v2426_v19 }
 0x15c   : > { %v2416_v44 = vor.u32 %v2415_v26, %v2411_v57  ;;  %v2441_v2 = vrot.slane %v2440_v10, 4  ;;  %v8263_v26 = vld [vmem:[%s8390_s2] ss:$0 sm:$0xff] }
 0x15d   : > { %v2431_v56 = vrot.slane %v2430_v43, 4 }
 0x15e   : > { %5971 = vmatmul.mubr.msk.bf16.gmra.mrb[16].mxu0 %vm683_vm3, %v5496_v61  ;;  %v2392_v61 = vor.u32 %v2391_v45, %v2387_v13  ;;  %v2417_v37 = vrot.slane %v2416_v44, 4  ;;  %v2446_v24 = vsel %vm6617_vm2, %v2441_v2, %v2445_v6 }
 0x15f   : > { %5835 = vmatmul.mubr.msk.bf16.vlgmr.msra.gmra.mrb[16].mxu1 %vm683_vm3, %v7975_v8  ;;  %5974 = vmatprep.mubr.msk.bf16.mxu0 %vm683_vm3, %v5497_v12  ;;  %v2406_v8 = vor.u32 %v2405_v0, %v2402_v18  ;;  %v5215_v12 = vcombine.low %v2364_v42, %v2374_v54  ;;  %v2436_v53 = vsel %vm6617_vm2, %v2431_v56, %v2435_v60 }
 0x160   : > { %5838 = vmatprep.mubr.msk.bf16.mxu1 %vm683_vm3, %v5213_v50  ;;  %v2393_v20 = vrot.slane %v2392_v61, 4  ;;  %v2422_v16 = vsel %vm6617_vm2, %v2417_v37, %v2421_v62  ;;  %v5218_v32 = vcombine.low %v2436_v53, %v2446_v24 }
 0x161   : > { %v2407_v14 = vrot.slane %v2406_v8, 4 }
 0x162   : > { %v2398_v46 = vsel %vm6617_vm2, %v2393_v20, %v2397_v25 }
 0x163   : > { %v5216_v34 = vcombine.low %v2388_v1, %v2398_v46 }
 0x166   : > { %5975 = vmatmul.mubr.msk.bf16.gmra.mrb[20].mxu0 %vm683_vm3, %v5498_v27  ;;  %v2412_v27 = vsel %vm6617_vm2, %v2407_v14, %v2411_v57 }
 0x167   : > { %5839 = vmatmul.mubr.msk.bf16.gmra.mrb[20].mxu1 %vm683_vm3, %v5214_v63  ;;  %5978 = vmatprep.mubr.msk.bf16.mxu0 %vm683_vm3, %v5499_v49  ;;  %v5217_v49 = vcombine.low %v2412_v27, %v2422_v16 }
 0x168   : > { %5842 = vmatprep.mubr.msk.bf16.mxu1 %vm683_vm3, %v5215_v12 }
 0x16e   : > { %5979 = vmatmul.mubr.msk.bf16.gmra.mrb[24].mxu0 %vm683_vm3, %v5500_v30 }
 0x16f   : > { %5843 = vmatmul.mubr.msk.bf16.gmra.mrb[24].mxu1 %vm683_vm3, %v5216_v34  ;;  %5982 = vmatprep.mubr.msk.bf16.mxu0 %vm683_vm3, %v5501_v35 }
 0x170   : > { %5846 = vmatprep.mubr.msk.bf16.mxu1 %vm683_vm3, %v5217_v49 }
 0x176   : > { %5983 = vmatmul.mubr.msk.bf16.gmra.mrb[28].mxu0 %vm683_vm3, %v5502_v22 }
 0x177   : > { %5847 = vmatmul.mubr.msk.bf16.gmra.mrb[28].mxu1 %vm683_vm3, %v5218_v32 }
 0x1f2   : > { %v5786_v55 = vpop.f32.mrb[0].mxu1 }
 0x1f3   : > { %v1856_v29 = vpop.f32.mrb[1].mxu1 }
 0x1f4   : > { %v5787_v30 = vpop.f32.mrb[2].mxu1 }
 0x1f5   : > { %v1859_v3 = vpop.f32.mrb[3].mxu1 }
 0x1fa   : > { %v5790_v39 = vpop.f32.mrb[4].mxu1 }
 0x1fb   : > { %v1872_v35 = vpop.f32.mrb[5].mxu1 }
 0x1fc   : > { %v5791_v23 = vpop.f32.mrb[6].mxu1 }
 0x1fd   : > { %v1875_v13 = vpop.f32.mrb[7].mxu1 }
 0x202   : > { %v5794_v28 = vpop.f32.mrb[8].mxu1 }
 0x203   : > { %v1888_v45 = vpop.f32.mrb[9].mxu1 }
 0x204   : > { %v5795_v50 = vpop.f32.mrb[10].mxu1 }
 0x205   : > { %v1891_v18 = vpop.f32.mrb[11].mxu1 }
 0x20a   : > { %v5798_v0 = vpop.f32.mrb[12].mxu1 }
 0x20b   : > { %v1904_v7 = vpop.f32.mrb[13].mxu1 }
 0x20c   : > { %v5799_v52 = vpop.f32.mrb[14].mxu1 }
 0x20d   : > { %v1907_v22 = vpop.f32.mrb[15].mxu1 }
 0x211   : > { %v5956_v57 = vpop.f32.mrb[0].mxu0 }
 0x212   : > { %v5988_v4 = vadd.f32 %v5956_v57, %v5786_v55  ;;  %v4630_v48 = vpop.f32.mrb[1].mxu0 }
 0x213   : > { %v5989_v47 = vadd.f32 %v4630_v48, %v1856_v29  ;;  %v5957_v42 = vpop.f32.mrb[2].mxu0 }
 0x214   : > { %v4798_v54 = vadd.f32 %v5988_v4, %v8263_v26  ;;  %v5990_v58 = vadd.f32 %v5957_v42, %v5787_v30  ;;  %v4633_v61 = vpop.f32.mrb[3].mxu0 }
 0x215   : > { %v4796_v41 = vadd.f32 %v5989_v47, %v8263_v26  ;;  %v5991_v59 = vadd.f32 %v4633_v61, %v1859_v3 }
 0x216   : > { %4830 = vst [vmem:[%s8267_s19 + $0x10] sm:$0xff] %v4798_v54  ;;  %v4799_v38 = vadd.f32 %v5990_v58, %v8263_v26 }
 0x217   : > { %4828 = vst [vmem:[%s8267_s19] sm:$0xff] %v4796_v41  ;;  %v4797_v17 = vadd.f32 %v5991_v59, %v8263_v26 }
 0x218   : > { %4831 = vst [vmem:[%s8267_s19 + $0x18] sm:$0xff] %v4799_v38 }
 0x219   : > { %4829 = vst [vmem:[%s8267_s19 + $0x8] sm:$0xff] %v4797_v17  ;;  %v5960_v9 = vpop.f32.mrb[4].mxu0 }
 0x21a   : > { %v5992_v21 = vadd.f32 %v5960_v9, %v5790_v39  ;;  %v4646_v31 = vpop.f32.mrb[5].mxu0 }
 0x21b   : > { %v5993_v8 = vadd.f32 %v4646_v31, %v1872_v35  ;;  %v5961_v44 = vpop.f32.mrb[6].mxu0 }
 0x21c   : > { %v4802_v33 = vadd.f32 %v5992_v21, %v8263_v26  ;;  %v5994_v40 = vadd.f32 %v5961_v44, %v5791_v23  ;;  %v4649_v63 = vpop.f32.mrb[7].mxu0 }
 0x21d   : > { %v4800_v12 = vadd.f32 %v5993_v8, %v8263_v26  ;;  %v5995_v15 = vadd.f32 %v4649_v63, %v1875_v13 }
 0x21e   : > { %4834 = vst [vmem:[%s8267_s19 + $0x30] sm:$0xff] %v4802_v33  ;;  %v4803_v20 = vadd.f32 %v5994_v40, %v8263_v26 }
 0x21f   : > { %4832 = vst [vmem:[%s8267_s19 + $0x20] sm:$0xff] %v4800_v12  ;;  %v4801_v25 = vadd.f32 %v5995_v15, %v8263_v26 }
 0x220   : > { %4835 = vst [vmem:[%s8267_s19 + $0x38] sm:$0xff] %v4803_v20 }
 0x221   : > { %4833 = vst [vmem:[%s8267_s19 + $0x28] sm:$0xff] %v4801_v25  ;;  %v5964_v19 = vpop.f32.mrb[8].mxu0 }
 0x222   : > { %v5996_v36 = vadd.f32 %v5964_v19, %v5794_v28  ;;  %v4662_v60 = vpop.f32.mrb[9].mxu0 }
 0x223   : > { %v5997_v11 = vadd.f32 %v4662_v60, %v1888_v45  ;;  %v5965_v14 = vpop.f32.mrb[10].mxu0 }
 0x224   : > { %v4806_v37 = vadd.f32 %v5996_v36, %v8263_v26  ;;  %v5998_v62 = vadd.f32 %v5965_v14, %v5795_v50  ;;  %v4665_v1 = vpop.f32.mrb[11].mxu0 }
 0x225   : > { %v4804_v46 = vadd.f32 %v5997_v11, %v8263_v26  ;;  %v5999_v43 = vadd.f32 %v4665_v1, %v1891_v18 }
 0x226   : > { %4838 = vst [vmem:[%s8267_s19 + $0x50] sm:$0xff] %v4806_v37  ;;  %v4807_v10 = vadd.f32 %v5998_v62, %v8263_v26 }
 0x227   : > { %4836 = vst [vmem:[%s8267_s19 + $0x40] sm:$0xff] %v4804_v46  ;;  %v4805_v51 = vadd.f32 %v5999_v43, %v8263_v26 }
 0x228   : > { %4839 = vst [vmem:[%s8267_s19 + $0x58] sm:$0xff] %v4807_v10 }
 0x229   : > { %4837 = vst [vmem:[%s8267_s19 + $0x48] sm:$0xff] %v4805_v51  ;;  %v5968_v5 = vpop.f32.mrb[12].mxu0 }
 0x22a   : > { %v6000_v27 = vadd.f32 %v5968_v5, %v5798_v0  ;;  %v4678_v16 = vpop.f32.mrb[13].mxu0 }
 0x22b   : > { %v6001_v34 = vadd.f32 %v4678_v16, %v1904_v7  ;;  %v5969_v49 = vpop.f32.mrb[14].mxu0 }
 0x22c   : > { %v4810_v56 = vadd.f32 %v6000_v27, %v8263_v26  ;;  %v6002_v2 = vadd.f32 %v5969_v49, %v5799_v52  ;;  %v4681_v6 = vpop.f32.mrb[15].mxu0 }
 0x22d   : > { %v4808_v53 = vadd.f32 %v6001_v34, %v8263_v26  ;;  %v6003_v24 = vadd.f32 %v4681_v6, %v1907_v22 }
 0x22e   : > { %4842 = vst [vmem:[%s8267_s19 + $0x70] sm:$0xff] %v4810_v56  ;;  %v4811_v32 = vadd.f32 %v6002_v2, %v8263_v26 }
 0x22f   : > { %4840 = vst [vmem:[%s8267_s19 + $0x60] sm:$0xff] %v4808_v53  ;;  %v4809_v55 = vadd.f32 %v6003_v24, %v8263_v26 }
 0x230   : > { %4843 = vst [vmem:[%s8267_s19 + $0x78] sm:$0xff] %v4811_v32 }
 0x231   : > { %4841 = vst [vmem:[%s8267_s19 + $0x68] sm:$0xff] %v4809_v55  ;;  %v5972_v29 = vpop.f32.mrb[16].mxu0 }
 0x232   : > { %v5836_v30 = vpop.f32.mrb[16].mxu1  ;;  %v4694_v3 = vpop.f32.mrb[17].mxu0 }
 0x233   : > { %v6004_v39 = vadd.f32 %v5972_v29, %v5836_v30  ;;  %v2650_v35 = vpop.f32.mrb[17].mxu1  ;;  %v5973_v23 = vpop.f32.mrb[18].mxu0 }
 0x234   : > { %v6005_v13 = vadd.f32 %v4694_v3, %v2650_v35  ;;  %v5837_v28 = vpop.f32.mrb[18].mxu1  ;;  %v4697_v45 = vpop.f32.mrb[19].mxu0 }
 0x235   : > { %v4814_v50 = vadd.f32 %v6004_v39, %v8263_v26  ;;  %v6006_v18 = vadd.f32 %v5973_v23, %v5837_v28  ;;  %v2653_v0 = vpop.f32.mrb[19].mxu1 }
 0x236   : > { %v4812_v7 = vadd.f32 %v6005_v13, %v8263_v26  ;;  %v6007_v52 = vadd.f32 %v4697_v45, %v2653_v0 }
 0x237   : > { %4846 = vst [vmem:[%s8267_s19 + $0x90] sm:$0xff] %v4814_v50  ;;  %v4815_v22 = vadd.f32 %v6006_v18, %v8263_v26 }
 0x238   : > { %4844 = vst [vmem:[%s8267_s19 + $0x80] sm:$0xff] %v4812_v7  ;;  %v4813_v57 = vadd.f32 %v6007_v52, %v8263_v26 }
 0x239   : > { %4847 = vst [vmem:[%s8267_s19 + $0x98] sm:$0xff] %v4815_v22  ;;  %v5976_v4 = vpop.f32.mrb[20].mxu0 }
 0x23a   : > { %4845 = vst [vmem:[%s8267_s19 + $0x88] sm:$0xff] %v4813_v57  ;;  %v5840_v48 = vpop.f32.mrb[20].mxu1  ;;  %v4710_v47 = vpop.f32.mrb[21].mxu0 }
 0x23b   : > { %v6008_v42 = vadd.f32 %v5976_v4, %v5840_v48  ;;  %v2666_v54 = vpop.f32.mrb[21].mxu1  ;;  %v5977_v58 = vpop.f32.mrb[22].mxu0 }
 0x23c   : > { %v6009_v61 = vadd.f32 %v4710_v47, %v2666_v54  ;;  %v5841_v41 = vpop.f32.mrb[22].mxu1  ;;  %v4713_v59 = vpop.f32.mrb[23].mxu0 }
 0x23d   : > { %v4818_v38 = vadd.f32 %v6008_v42, %v8263_v26  ;;  %v6010_v17 = vadd.f32 %v5977_v58, %v5841_v41  ;;  %v2669_v9 = vpop.f32.mrb[23].mxu1 }
 0x23e   : > { %v4816_v21 = vadd.f32 %v6009_v61, %v8263_v26  ;;  %v6011_v31 = vadd.f32 %v4713_v59, %v2669_v9 }
 0x23f   : > { %4850 = vst [vmem:[%s8267_s19 + $0xb0] sm:$0xff] %v4818_v38  ;;  %v4819_v8 = vadd.f32 %v6010_v17, %v8263_v26 }
 0x240   : > { %4848 = vst [vmem:[%s8267_s19 + $0xa0] sm:$0xff] %v4816_v21  ;;  %v4817_v44 = vadd.f32 %v6011_v31, %v8263_v26 }
 0x241   : > { %4851 = vst [vmem:[%s8267_s19 + $0xb8] sm:$0xff] %v4819_v8  ;;  %v5980_v33 = vpop.f32.mrb[24].mxu0 }
 0x242   : > { %4849 = vst [vmem:[%s8267_s19 + $0xa8] sm:$0xff] %v4817_v44  ;;  %v5844_v40 = vpop.f32.mrb[24].mxu1  ;;  %v4726_v63 = vpop.f32.mrb[25].mxu0 }
 0x243   : > { %v6012_v12 = vadd.f32 %v5980_v33, %v5844_v40  ;;  %v2682_v15 = vpop.f32.mrb[25].mxu1  ;;  %v5981_v20 = vpop.f32.mrb[26].mxu0 }
 0x244   : > { %v6013_v25 = vadd.f32 %v4726_v63, %v2682_v15  ;;  %v5845_v19 = vpop.f32.mrb[26].mxu1  ;;  %v4729_v36 = vpop.f32.mrb[27].mxu0 }
 0x245   : > { %v4822_v60 = vadd.f32 %v6012_v12, %v8263_v26  ;;  %v6014_v11 = vadd.f32 %v5981_v20, %v5845_v19  ;;  %v2685_v14 = vpop.f32.mrb[27].mxu1 }
 0x246   : > { %v4820_v37 = vadd.f32 %v6013_v25, %v8263_v26  ;;  %v6015_v62 = vadd.f32 %v4729_v36, %v2685_v14 }
 0x247   : > { %4854 = vst [vmem:[%s8267_s19 + $0xd0] sm:$0xff] %v4822_v60  ;;  %v4823_v1 = vadd.f32 %v6014_v11, %v8263_v26 }
 0x248   : > { %4852 = vst [vmem:[%s8267_s19 + $0xc0] sm:$0xff] %v4820_v37  ;;  %v4821_v46 = vadd.f32 %v6015_v62, %v8263_v26 }
 0x249   : > { %4855 = vst [vmem:[%s8267_s19 + $0xd8] sm:$0xff] %v4823_v1  ;;  %v5984_v43 = vpop.f32.mrb[28].mxu0 }
 0x24a   : > { %4853 = vst [vmem:[%s8267_s19 + $0xc8] sm:$0xff] %v4821_v46  ;;  %v5848_v10 = vpop.f32.mrb[28].mxu1  ;;  %v4742_v51 = vpop.f32.mrb[29].mxu0 }
 0x24b   : > { %v6016_v5 = vadd.f32 %v5984_v43, %v5848_v10  ;;  %v2698_v27 = vpop.f32.mrb[29].mxu1  ;;  %v5985_v16 = vpop.f32.mrb[30].mxu0 }
 0x24c   : > { %v6017_v34 = vadd.f32 %v4742_v51, %v2698_v27  ;;  %v5849_v49 = vpop.f32.mrb[30].mxu1  ;;  %v4745_v56 = vpop.f32.mrb[31].mxu0 }
 0x24d   : > { %v4826_v2 = vadd.f32 %v6016_v5, %v8263_v26  ;;  %v6018_v6 = vadd.f32 %v5985_v16, %v5849_v49  ;;  %v2701_v53 = vpop.f32.mrb[31].mxu1 }
 0x24e   : > { %v4824_v24 = vadd.f32 %v6017_v34, %v8263_v26  ;;  %v6019_v32 = vadd.f32 %v4745_v56, %v2701_v53 }
 0x24f   : > { %4858 = vst [vmem:[%s8267_s19 + $0xf0] sm:$0xff] %v4826_v2  ;;  %v4827_v55 = vadd.f32 %v6018_v6, %v8263_v26 }
 0x250   : > { %4856 = vst [vmem:[%s8267_s19 + $0xe0] sm:$0xff] %v4824_v24  ;;  %v4825_v29 = vadd.f32 %v6019_v32, %v8263_v26 }
 0x251   : > { %4859 = vst [vmem:[%s8267_s19 + $0xf8] sm:$0xff] %v4827_v55 }
 0x252   : > { %4857 = vst [vmem:[%s8267_s19 + $0xe8] sm:$0xff] %v4825_v29 }
 0x253   : > { %6431 = shalt.err (!%p6428_p5)
}
 0x254   : > { %s6432_s6 = scalar_lea.hbm %s8332_s28, 4096  ;;  %s6436_s9 = scalar_lea.hbm %s8391_s3, 8192 }
 0x255   : > { %p6433_p6 = scmp.ne.s32.totalorder %s8332_s28, %s6432_s6  ;;  %p6437_p10 = scmp.lt.u32.totalorder %s8332_s28, %s8391_s3 }
 0x256   : > { %p6438_p11 = scmp.lt.u32.totalorder %s6436_s9, %s6432_s6  ;;  %p6440_p13 = scmp.lt.u32.totalorder %s6432_s6, %s8332_s28 }
 0x257   : > { %p6434_p7 = pnand %p6433_p6, %p6561_p4 }
 0x258   : > { %p6439_p12 = por %p6438_p11, %p6437_p10 }
 0x259   : > { %p6435_p9 = pneg %p6434_p7 }
 0x25a   : > { %p6441_p0 = por %p6440_p13, %p6439_p12 }
 0x25c   : > { %p6442_p1 = pnand %p6441_p0, %p6435_p9 }
 0x25e   : > { %6445 = shalt.err (!%p6442_p1)
}
 0x25f   : > { %s6499_s18 = smov 128   ;;  %s6500_s19 = smov 8  }
 0x260   : > { %6245 = dma.vmem_to_hbm [thread:$0]  (%p6561_p4), %s8334_s23, 4096, %s8332_s28, %s8342_s15, %s6499_s18, %s6499_s18, %s6500_s19  }
 0x261 PF: > { %p6251_p2 = scmp.ge.s32.totalorder %s6496_s17, 2  ;;  %s4892_s21 = sand.u32 1, %s6476_s12  }
 0x262   : > { %s4893_s26 = scalar_lea.sflag [#allocation3], %s4892_s21 }
 0x263   : > { %p6248_p3 = pnand %p6251_p2, %p6568_p8 }
 0x265   : > { %6471 = dma.done.wait (!%p6248_p3), %s4893_s26, 4096  }
 0x266   : > { %6473 = vsyncadd (!%p6248_p3), %s4893_s26, 4294963200  ;;  %s16_s17 = sadd.s32 1, %s6496_s17   ;;  %s8458_s12 = smov %s6480_s13 }
 0x267   : > { %p13_p5 = scmp.ge.s32.totalorder %s16_s17, 4   ;;  %s8459_s13 = smov %s6484_s14 }
 0x268   : > { %s8460_s14 = smov %s6574_s25  ;;  %s8461_s15 = smov %s6492_s16 }
 0x269   : > { %s8462_s16 = smov %s8464_s20  ;;  %15 = sbr.rel (!%p13_p5) target bundleno = 4 (0x4), region = 78 }
 0x270   :  { %4898 = vsyncpa [#allocation3], 1 }
 0x271   :  { %4900 = vsyncpa [#allocation3 + $0x1], 1 }

</bundles_post_ra>
